<compile_context>
chip_gen: v7x
topology: tpu7x:2x2x1
jax: 0.10.0
libtpu: 0.0.40
codegen_flags: <defaults>
</compile_context>

<pallas_src>
from functools import partial

import jax
import jax.numpy as jnp
from jax.experimental import pallas as pl
from jax.experimental.pallas import tpu as pltpu

EPS = 1e-5


# ---------------------------------------------------------------------------
# In-kernel helpers
# ---------------------------------------------------------------------------
def _lane_replicate(vec_ref, width):
    """Per-channel (1, C) vector -> lane-dense (1, width*C) row.

    out[0, wi*C + c] = vec[0, c], computed as one tiny MXU dot against a 0/1
    replication matrix built from iota compares.  Keeps the VPU/XLU path free
    of lane-relayout reshapes; the MXU has huge slack in this kernel.
    """
    c = vec_ref.shape[1]
    lane = jax.lax.broadcasted_iota(jnp.int32, (c, width * c), 1)
    chan = jax.lax.broadcasted_iota(jnp.int32, (c, width * c), 0)
    repl = (lane % c == chan).astype(jnp.float32)
    return jnp.dot(vec_ref[...], repl, preferred_element_type=jnp.float32)


def _conv3x3_banded(xv, wband_ref, matmul_dtype):
    """3x3 conv, padding=1, on one lane-dense image.

    xv:        (H, W*Cin) f32 value (channels innermost within lanes).
    wband_ref: (3, W*Cin, W*Cout) banded weights; band dy already encodes the
               dx taps and the left/right zero padding as zero blocks.
    Returns    (H, W*Cout) f32 raw conv output (no bias).
    """
    h, _ = xv.shape
    # 0/1 row-shift matrices with zero-filled halo rows:
    #   (s_up @ x)[r] = x[r-1] (zero at r=0),  (s_dn @ x)[r] = x[r+1] (zero at
    #   r=H-1).  Doing the +-1 row shift on the MXU avoids sublane-unaligned
    #   slices / concats (pure relayout work on the VPU/XLU) entirely.
    row = jax.lax.broadcasted_iota(jnp.int32, (h, h), 0)
    col = jax.lax.broadcasted_iota(jnp.int32, (h, h), 1)
    s_up = (col == row - 1).astype(jnp.float32)
    s_dn = (col == row + 1).astype(jnp.float32)
    x_above = jnp.dot(s_up, xv, preferred_element_type=jnp.float32)   # x[r-1]
    x_below = jnp.dot(s_dn, xv, preferred_element_type=jnp.float32)   # x[r+1]

    def band_mm(lhs, dy):
        return jnp.dot(lhs.astype(matmul_dtype),
                       wband_ref[dy].astype(matmul_dtype),
                       preferred_element_type=jnp.float32)

    # dy = 0 reads the row above, dy = 1 the row itself, dy = 2 the row below.
    return band_mm(x_above, 0) + band_mm(xv, 1) + band_mm(x_below, 2)


def _write_stats(acc, sum_ref, ssq_ref):
    # Per-image, per-(width, channel) partial sums; reduced (tiny) in the
    # wrapper.  TODO(synk): switch to Chan-style centered partials if the
    # E[x^2]-E[x]^2 cancellation ever bites at production sizes.
    sum_ref[...] = jnp.sum(acc, axis=0, keepdims=True)[None]
    ssq_ref[...] = jnp.sum(acc * acc, axis=0, keepdims=True)[None]


# ---------------------------------------------------------------------------
# Kernels (one grid step = one image; all blocks lane-dense)
# ---------------------------------------------------------------------------
def conv_stats_kernel(x_ref, wband_ref, bias_ref, y_ref, sum_ref, ssq_ref,
                      *, matmul_dtype):
    """conv1 + bias, plus per-image BN1 partial sums."""
    cout = bias_ref.shape[1]
    width = y_ref.shape[2] // cout

    acc = _conv3x3_banded(x_ref[0], wband_ref, matmul_dtype)      # (H, W*Cout)
    acc = acc + _lane_replicate(bias_ref, width)

    _write_stats(acc, sum_ref, ssq_ref)
    y_ref[...] = acc[None].astype(y_ref.dtype)


def bnrelu_conv_stats_kernel(y1_ref, scale_ref, shift_ref, wband_ref, bias_ref,
                             y_ref, sum_ref, ssq_ref, *, matmul_dtype):
    """Fused [BN1 affine + ReLU] on the raw conv1 output, then conv2 + bias and
    per-image BN2 partial sums.  Saves one full activation HBM round-trip plus
    the jnp.pad pass compared with a separate bn_relu kernel."""
    c1 = scale_ref.shape[1]
    width = y1_ref.shape[2] // c1

    a = jnp.maximum(y1_ref[0] * _lane_replicate(scale_ref, width)
                    + _lane_replicate(shift_ref, width), 0.0)     # (H, W*C1)

    acc = _conv3x3_banded(a, wband_ref, matmul_dtype)             # (H, W*Cout)
    acc = acc + _lane_replicate(bias_ref, width)

    _write_stats(acc, sum_ref, ssq_ref)
    y_ref[...] = acc[None].astype(y_ref.dtype)


def bn_relu_kernel(y_ref, scale_ref, shift_ref, o_ref):
    """Fused BN2 affine + ReLU; (1, H, W*C) lane-dense blocks, full-lane stores."""
    c = scale_ref.shape[1]
    width = y_ref.shape[2] // c
    o_ref[...] = jnp.maximum(
        y_ref[...] * _lane_replicate(scale_ref, width)
        + _lane_replicate(shift_ref, width), 0.0).astype(o_ref.dtype)


# ---------------------------------------------------------------------------
# pallas_call wrappers
# ---------------------------------------------------------------------------
def _compiler_params():
    # Batch axis shards across v7x TensorCores; blocks here are KB-scale so the
    # explicit VMEM limit is just headroom awareness (double-buffered inputs).
    return pltpu.CompilerParams(
        dimension_semantics=("parallel",),
        vmem_limit_bytes=32 * 1024 * 1024)


def _conv_stats(x_ld, band, bias, matmul_dtype):
    n, h, wcin = x_ld.shape
    wcout = band.shape[2]
    cout = bias.shape[1]
    return pl.pallas_call(
        partial(conv_stats_kernel, matmul_dtype=matmul_dtype),
        out_shape=(
            jax.ShapeDtypeStruct((n, h, wcout), jnp.float32),
            jax.ShapeDtypeStruct((n, 1, wcout), jnp.float32),
            jax.ShapeDtypeStruct((n, 1, wcout), jnp.float32),
        ),
        grid=(n,),
        in_specs=[
            pl.BlockSpec((1, h, wcin), lambda i: (i, 0, 0)),
            pl.BlockSpec((3, wcin, wcout), lambda i: (0, 0, 0)),
            pl.BlockSpec((1, cout), lambda i: (0, 0)),
        ],
        out_specs=(
            pl.BlockSpec((1, h, wcout), lambda i: (i, 0, 0)),
            pl.BlockSpec((1, 1, wcout), lambda i: (i, 0, 0)),
            pl.BlockSpec((1, 1, wcout), lambda i: (i, 0, 0)),
        ),
        compiler_params=_compiler_params(),
    )(x_ld, band, bias)


def _bnrelu_conv_stats(y1, scale, shift, band, bias, matmul_dtype):
    n, h, wc1 = y1.shape
    wc2 = band.shape[2]
    c1 = scale.shape[1]
    c2 = bias.shape[1]
    return pl.pallas_call(
        partial(bnrelu_conv_stats_kernel, matmul_dtype=matmul_dtype),
        out_shape=(
            jax.ShapeDtypeStruct((n, h, wc2), jnp.float32),
            jax.ShapeDtypeStruct((n, 1, wc2), jnp.float32),
            jax.ShapeDtypeStruct((n, 1, wc2), jnp.float32),
        ),
        grid=(n,),
        in_specs=[
            pl.BlockSpec((1, h, wc1), lambda i: (i, 0, 0)),
            pl.BlockSpec((1, c1), lambda i: (0, 0)),
            pl.BlockSpec((1, c1), lambda i: (0, 0)),
            pl.BlockSpec((3, wc1, wc2), lambda i: (0, 0, 0)),
            pl.BlockSpec((1, c2), lambda i: (0, 0)),
        ],
        out_specs=(
            pl.BlockSpec((1, h, wc2), lambda i: (i, 0, 0)),
            pl.BlockSpec((1, 1, wc2), lambda i: (i, 0, 0)),
            pl.BlockSpec((1, 1, wc2), lambda i: (i, 0, 0)),
        ),
        compiler_params=_compiler_params(),
    )(y1, scale, shift, band, bias)


def _bn_relu(y, scale, shift):
    n, h, wc = y.shape
    c = scale.shape[1]
    return pl.pallas_call(
        bn_relu_kernel,
        out_shape=jax.ShapeDtypeStruct((n, h, wc), y.dtype),
        grid=(n,),
        in_specs=[
            pl.BlockSpec((1, h, wc), lambda i: (i, 0, 0)),
            pl.BlockSpec((1, c), lambda i: (0, 0)),
            pl.BlockSpec((1, c), lambda i: (0, 0)),
        ],
        out_specs=pl.BlockSpec((1, h, wc), lambda i: (i, 0, 0)),
        compiler_params=_compiler_params(),
    )(y, scale, shift)


# ---------------------------------------------------------------------------
# Wrapper-side (HBM) glue: banded weights, BN stat finalization, layout
# ---------------------------------------------------------------------------
def _banded_weight(w_oihw, width):
    """PyTorch (Cout, Cin, 3, 3) conv weight -> (3, W*Cin, W*Cout) block-banded
    matrices.  Band dy maps a lane-dense input row (W*Cin lanes) straight to a
    lane-dense output row (W*Cout lanes); out-of-range dx taps (the padding=1
    left/right border) are zero blocks."""
    co, ci, kh, kw = w_oihw.shape
    w_hwio = jnp.transpose(w_oihw, (2, 3, 1, 0))               # (3, 3, Cin, Cout)
    wi = jnp.arange(width)[None, :, None]
    wo = jnp.arange(width)[None, None, :]
    dx = jnp.arange(kw)[:, None, None]
    sel = (wi == wo + dx - 1).astype(w_oihw.dtype)             # (3, W, W)
    band = jnp.einsum("xab,yxco->yacbo", sel, w_hwio)          # (3, W, Ci, W, Co)
    return band.reshape(kh, width * ci, width * co)


def _bn_affine(sums, ssqs, gamma, beta, count):
    """Global training-mode BN stats (biased variance) from per-image partials,
    folded into one per-channel scale/shift:  y*scale + shift."""
    cout = gamma.shape[0]
    s = jnp.sum(sums.reshape(-1, cout), axis=0)
    q = jnp.sum(ssqs.reshape(-1, cout), axis=0)
    mean = s / count
    var = jnp.maximum(q / count - mean * mean, 0.0)
    scale = gamma * jax.lax.rsqrt(var + EPS)
    shift = beta - mean * scale
    return scale.reshape(1, cout), shift.reshape(1, cout)


def decoder_block(x_nchw, params, *, matmul_dtype=jnp.float32):
    """x_nchw: (N, Cin, H, W) float32.  Returns (N, Cout, H, W), training-mode BN."""
    n, cin, h, w = x_nchw.shape
    cout = params["w1"].shape[0]          # PyTorch conv weight: (Cout, Cin, 3, 3)
    count = n * h * w

    # HBM-side layout glue (once per call): NCHW -> lane-dense (N, H, W*Cin),
    # plus the banded conv weights.
    x_ld = jnp.transpose(x_nchw, (0, 2, 3, 1)).reshape(n, h, w * cin)
    band1 = _banded_weight(params["w1"], w)            # (3, W*Cin,  W*Cout)
    band2 = _banded_weight(params["w2"], w)            # (3, W*Cout, W*Cout)
    b1 = params["b1"].reshape(1, cout)
    b2 = params["b2"].reshape(1, cout)

    # ---- stage 1: conv1 (+ per-image BN1 partials) ----
    y1, s1, q1 = _conv_stats(x_ld, band1, b1, matmul_dtype)
    sc1, sh1 = _bn_affine(s1, q1, params["g1"], params["be1"], count)

    # ---- stage 2: fused BN1 + ReLU -> conv2 (+ per-image BN2 partials) ----
    y2, s2, q2 = _bnrelu_conv_stats(y1, sc1, sh1, band2, b2, matmul_dtype)
    sc2, sh2 = _bn_affine(s2, q2, params["g2"], params["be2"], count)

    # ---- stage 3: fused BN2 + ReLU (lane-dense elementwise) ----
    out_ld = _bn_relu(y2, sc2, sh2)                    # (N, H, W*Cout)

    out = out_ld.reshape(n, h, w, cout)
    # NOTE(perf): if the consumer accepts NHWC, return `out` here and skip this
    # final transpose (it is one extra HBM read+write of the activation).
    return jnp.transpose(out, (0, 3, 1, 2))            # NCHW


def reference_forward(x, params):
    """Pure-JAX reference of DecoderBlock.forward (NCHW, training-mode BN)."""
    def conv(x, w, b):
        y = jax.lax.conv_general_dilated(
            x, w, window_strides=(1, 1), padding=((1, 1), (1, 1)),
            dimension_numbers=("NCHW", "OIHW", "NCHW"))
        return y + b[None, :, None, None]

    def bn_relu(y, g, be):
        mean = jnp.mean(y, axis=(0, 2, 3), keepdims=True)
        var = jnp.mean((y - mean) ** 2, axis=(0, 2, 3), keepdims=True)
        y = (y - mean) / jnp.sqrt(var + EPS) * g[None, :, None, None] \
            + be[None, :, None, None]
        return jnp.maximum(y, 0.0)

    y = bn_relu(conv(x, params["w1"], params["b1"]), params["g1"], params["be1"])
    z = bn_relu(conv(y, params["w2"], params["b2"]), params["g2"], params["be2"])
    return z


if __name__ == "__main__":
    key = jax.random.PRNGKey(0)
    N, Cin, Cout, H, W = 2, 4, 8, 16, 16

    k_x, k_w1, k_b1, k_w2, k_b2 = jax.random.split(key, 5)
    x = jax.random.normal(k_x, (N, Cin, H, W), jnp.float32)

    params = {
        "w1": jax.random.normal(k_w1, (Cout, Cin, 3, 3), jnp.float32) * 0.1,
        "b1": jax.random.normal(k_b1, (Cout,), jnp.float32) * 0.05,
        "g1": jnp.ones((Cout,), jnp.float32),
        "be1": jnp.zeros((Cout,), jnp.float32),
        "w2": jax.random.normal(k_w2, (Cout, Cout, 3, 3), jnp.float32) * 0.1,
        "b2": jax.random.normal(k_b2, (Cout,), jnp.float32) * 0.05,
        "g2": jnp.ones((Cout,), jnp.float32),
        "be2": jnp.zeros((Cout,), jnp.float32),
    }

    out = jax.jit(decoder_block)(x, params)
    out = jax.block_until_ready(out)

    ref = reference_forward(x, params)
    assert out.shape == (N, Cout, H, W)
    assert jnp.allclose(out, ref, rtol=1e-4, atol=1e-4), \
        f"max abs err {jnp.max(jnp.abs(out - ref))}"

    print("KERNEL_OK")
</pallas_src>

<mosaic_0001>
module attributes {stable_mosaic.version = 11 : i64} {
  func.func @conv_stats_kernel(%arg0: i32, %arg1: memref<1x16x64xf32, #tpu.memory_space<vmem>>, %arg2: memref<3x64x128xf32, #tpu.memory_space<vmem>>, %arg3: memref<1x8xf32, #tpu.memory_space<vmem>>, %arg4: memref<1x16x128xf32, #tpu.memory_space<vmem>>, %arg5: memref<1x1x128xf32, #tpu.memory_space<vmem>>, %arg6: memref<1x1x128xf32, #tpu.memory_space<vmem>>) attributes {dimension_semantics = [#tpu.dimension_semantics<parallel>], iteration_bounds = array<i64: 2>, scalar_prefetch = 0 : i64, scratch_operands = 0 : i64, tpu.core_type = #tpu.core_type<tc>, window_params = [{transform_indices = @transform_0, window_bounds = array<i64: 1, 16, 64>}, {pipeline_mode = #tpu.pipeline_mode<synchronous>, transform_indices = @transform_1, window_bounds = array<i64: 3, 64, 128>}, {pipeline_mode = #tpu.pipeline_mode<synchronous>, transform_indices = @transform_2, window_bounds = array<i64: 1, 8>}, {transform_indices = @transform_3, window_bounds = array<i64: 1, 16, 128>}, {transform_indices = @transform_4, window_bounds = array<i64: 1, 1, 128>}, {transform_indices = @transform_5, window_bounds = array<i64: 1, 1, 128>}]} {
    %c0 = arith.constant 0 : index
    %c0_0 = arith.constant 0 : index
    %c0_1 = arith.constant 0 : index
    %0 = vector.load %arg1[%c0, %c0_0, %c0_1] : memref<1x16x64xf32, #tpu.memory_space<vmem>>, vector<1x16x64xf32>
    %1 = vector.shape_cast %0 : vector<1x16x64xf32> to vector<16x64xf32>
    %2 = tpu.iota {dimensions = array<i32: 0>} : vector<16x16xi32>
    %3 = tpu.iota {dimensions = array<i32: 1>} : vector<16x16xi32>
    %c1_i32 = arith.constant 1 : i32
    %4 = vector.broadcast %c1_i32 : i32 to vector<16x16xi32>
    %5 = arith.subi %2, %4 : vector<16x16xi32>
    %6 = arith.cmpi eq, %3, %5 : vector<16x16xi32>
    %7 = arith.extui %6 : vector<16x16xi1> to vector<16x16xi32>
    %8 = arith.sitofp %7 : vector<16x16xi32> to vector<16x16xf32>
    %c1_i32_2 = arith.constant 1 : i32
    %9 = vector.broadcast %c1_i32_2 : i32 to vector<16x16xi32>
    %10 = arith.addi %2, %9 : vector<16x16xi32>
    %11 = arith.cmpi eq, %3, %10 : vector<16x16xi32>
    %12 = arith.extui %11 : vector<16x16xi1> to vector<16x16xi32>
    %13 = arith.sitofp %12 : vector<16x16xi32> to vector<16x16xf32>
    %cst = arith.constant dense<0.000000e+00> : vector<16x64xf32>
    %14 = tpu.matmul %8, %1, %cst {dimension_numbers = #tpu.dot_dimension_numbers<[1], [0], [0], [1], [0, 0, 1, 1], [], []>} : vector<16x16xf32>, vector<16x64xf32>, vector<16x64xf32> -> vector<16x64xf32>
    %cst_3 = arith.constant dense<0.000000e+00> : vector<16x64xf32>
    %15 = tpu.matmul %13, %1, %cst_3 {dimension_numbers = #tpu.dot_dimension_numbers<[1], [0], [0], [1], [0, 0, 1, 1], [], []>} : vector<16x16xf32>, vector<16x64xf32>, vector<16x64xf32> -> vector<16x64xf32>
    %c0_4 = arith.constant 0 : index
    %c0_5 = arith.constant 0 : index
    %c0_6 = arith.constant 0 : index
    %16 = vector.load %arg2[%c0_4, %c0_5, %c0_6] : memref<3x64x128xf32, #tpu.memory_space<vmem>>, vector<1x64x128xf32>
    %17 = vector.shape_cast %16 : vector<1x64x128xf32> to vector<64x128xf32>
    %cst_7 = arith.constant dense<0.000000e+00> : vector<16x128xf32>
    %18 = tpu.matmul %14, %17, %cst_7 {dimension_numbers = #tpu.dot_dimension_numbers<[1], [0], [0], [1], [0, 0, 1, 1], [], []>} : vector<16x64xf32>, vector<64x128xf32>, vector<16x128xf32> -> vector<16x128xf32>
    %c1 = arith.constant 1 : index
    %c0_8 = arith.constant 0 : index
    %c0_9 = arith.constant 0 : index
    %19 = vector.load %arg2[%c1, %c0_8, %c0_9] : memref<3x64x128xf32, #tpu.memory_space<vmem>>, vector<1x64x128xf32>
    %20 = vector.shape_cast %19 : vector<1x64x128xf32> to vector<64x128xf32>
    %cst_10 = arith.constant dense<0.000000e+00> : vector<16x128xf32>
    %21 = tpu.matmul %1, %20, %cst_10 {dimension_numbers = #tpu.dot_dimension_numbers<[1], [0], [0], [1], [0, 0, 1, 1], [], []>} : vector<16x64xf32>, vector<64x128xf32>, vector<16x128xf32> -> vector<16x128xf32>
    %22 = arith.addf %18, %21 : vector<16x128xf32>
    %c2 = arith.constant 2 : index
    %c0_11 = arith.constant 0 : index
    %c0_12 = arith.constant 0 : index
    %23 = vector.load %arg2[%c2, %c0_11, %c0_12] : memref<3x64x128xf32, #tpu.memory_space<vmem>>, vector<1x64x128xf32>
    %24 = vector.shape_cast %23 : vector<1x64x128xf32> to vector<64x128xf32>
    %cst_13 = arith.constant dense<0.000000e+00> : vector<16x128xf32>
    %25 = tpu.matmul %15, %24, %cst_13 {dimension_numbers = #tpu.dot_dimension_numbers<[1], [0], [0], [1], [0, 0, 1, 1], [], []>} : vector<16x64xf32>, vector<64x128xf32>, vector<16x128xf32> -> vector<16x128xf32>
    %26 = arith.addf %22, %25 : vector<16x128xf32>
    %27 = tpu.iota {dimensions = array<i32: 1>} : vector<8x128xi32>
    %28 = tpu.iota {dimensions = array<i32: 0>} : vector<8x128xi32>
    %c8_i32 = arith.constant 8 : i32
    %c0_i32 = arith.constant 0 : i32
    %29 = arith.cmpi eq, %c8_i32, %c0_i32 : i32
    %c1_i32_14 = arith.constant 1 : i32
    %30 = arith.select %29, %c1_i32_14, %c8_i32 : i32
    %31 = vector.broadcast %30 : i32 to vector<8x128xi32>
    %32 = arith.remsi %27, %31 : vector<8x128xi32>
    %c0_i32_15 = arith.constant 0 : i32
    %33 = vector.broadcast %c0_i32_15 : i32 to vector<8x128xi32>
    %34 = arith.cmpi ne, %32, %33 : vector<8x128xi32>
    %c0_i32_16 = arith.constant 0 : i32
    %35 = vector.broadcast %c0_i32_16 : i32 to vector<8x128xi32>
    %36 = arith.cmpi slt, %32, %35 : vector<8x128xi32>
    %c0_i32_17 = arith.constant 0 : i32
    %37 = arith.cmpi slt, %30, %c0_i32_17 : i32
    %38 = vector.broadcast %37 : i1 to vector<8x128xi1>
    %39 = vector.broadcast %38 : vector<8x128xi1> to vector<8x128xi1>
    %40 = arith.xori %36, %39 : vector<8x128xi1>
    %41 = arith.andi %40, %34 : vector<8x128xi1>
    %42 = vector.broadcast %30 : i32 to vector<8x128xi32>
    %43 = arith.addi %32, %42 : vector<8x128xi32>
    %44 = arith.select %41, %43, %32 : vector<8x128xi1>, vector<8x128xi32>
    %45 = arith.cmpi eq, %44, %28 : vector<8x128xi32>
    %46 = arith.extui %45 : vector<8x128xi1> to vector<8x128xi32>
    %47 = arith.sitofp %46 : vector<8x128xi32> to vector<8x128xf32>
    %c0_18 = arith.constant 0 : index
    %c0_19 = arith.constant 0 : index
    %48 = vector.load %arg3[%c0_18, %c0_19] : memref<1x8xf32, #tpu.memory_space<vmem>>, vector<1x8xf32>
    %cst_20 = arith.constant dense<0.000000e+00> : vector<1x128xf32>
    %49 = tpu.matmul %48, %47, %cst_20 {dimension_numbers = #tpu.dot_dimension_numbers<[1], [0], [0], [1], [0, 0, 1, 1], [], []>} : vector<1x8xf32>, vector<8x128xf32>, vector<1x128xf32> -> vector<1x128xf32>
    %50 = vector.broadcast %49 : vector<1x128xf32> to vector<16x128xf32>
    %51 = arith.addf %26, %50 : vector<16x128xf32>
    %cst_21 = arith.constant dense<0.000000e+00> : vector<128xf32>
    %52 = vector.multi_reduction <add>, %51, %cst_21 [0] : vector<16x128xf32> to vector<128xf32>
    %53 = vector.shape_cast %52 : vector<128xf32> to vector<1x128xf32>
    %54 = vector.shape_cast %53 : vector<1x128xf32> to vector<1x1x128xf32>
    %c0_22 = arith.constant 0 : index
    %c0_23 = arith.constant 0 : index
    %c0_24 = arith.constant 0 : index
    %55 = vector.load %arg5[%c0_22, %c0_23, %c0_24] : memref<1x1x128xf32, #tpu.memory_space<vmem>>, vector<1x1x128xf32>
    tpu.vector_store %arg5[%c0_22, %c0_23, %c0_24], %54 {strides = array<i32>} : memref<1x1x128xf32, #tpu.memory_space<vmem>>, vector<1x1x128xf32>,
    %56 = arith.mulf %51, %51 : vector<16x128xf32>
    %cst_25 = arith.constant dense<0.000000e+00> : vector<128xf32>
    %57 = vector.multi_reduction <add>, %56, %cst_25 [0] : vector<16x128xf32> to vector<128xf32>
    %58 = vector.shape_cast %57 : vector<128xf32> to vector<1x128xf32>
    %59 = vector.shape_cast %58 : vector<1x128xf32> to vector<1x1x128xf32>
    %c0_26 = arith.constant 0 : index
    %c0_27 = arith.constant 0 : index
    %c0_28 = arith.constant 0 : index
    %60 = vector.load %arg6[%c0_26, %c0_27, %c0_28] : memref<1x1x128xf32, #tpu.memory_space<vmem>>, vector<1x1x128xf32>
    tpu.vector_store %arg6[%c0_26, %c0_27, %c0_28], %59 {strides = array<i32>} : memref<1x1x128xf32, #tpu.memory_space<vmem>>, vector<1x1x128xf32>,
    %61 = vector.shape_cast %51 : vector<16x128xf32> to vector<1x16x128xf32>
    %c0_29 = arith.constant 0 : index
    %c0_30 = arith.constant 0 : index
    %c0_31 = arith.constant 0 : index
    %62 = vector.load %arg4[%c0_29, %c0_30, %c0_31] : memref<1x16x128xf32, #tpu.memory_space<vmem>>, vector<1x16x128xf32>
    tpu.vector_store %arg4[%c0_29, %c0_30, %c0_31], %61 {strides = array<i32>} : memref<1x16x128xf32, #tpu.memory_space<vmem>>, vector<1x16x128xf32>,
    return
  }
  func.func @transform_0(%arg0: i32) -> (i32, i32, i32) {
    %c0_i32 = arith.constant 0 : i32
    %c0_i32_0 = arith.constant 0 : i32
    %c0_i32_1 = arith.constant 0 : i32
    return %arg0, %c0_i32, %c0_i32_0 : i32, i32, i32
  }
  func.func @transform_1(%arg0: i32) -> (i32, i32, i32) {
    %c0_i32 = arith.constant 0 : i32
    %c0_i32_0 = arith.constant 0 : i32
    %c0_i32_1 = arith.constant 0 : i32
    %c0_i32_2 = arith.constant 0 : i32
    return %c0_i32, %c0_i32_0, %c0_i32_1 : i32, i32, i32
  }
  func.func @transform_2(%arg0: i32) -> (i32, i32) {
    %c0_i32 = arith.constant 0 : i32
    %c0_i32_0 = arith.constant 0 : i32
    %c0_i32_1 = arith.constant 0 : i32
    return %c0_i32, %c0_i32_0 : i32, i32
  }
  func.func @transform_3(%arg0: i32) -> (i32, i32, i32) {
    %c0_i32 = arith.constant 0 : i32
    %c0_i32_0 = arith.constant 0 : i32
    %c0_i32_1 = arith.constant 0 : i32
    return %arg0, %c0_i32, %c0_i32_0 : i32, i32, i32
  }
  func.func @transform_4(%arg0: i32) -> (i32, i32, i32) {
    %c0_i32 = arith.constant 0 : i32
    %c0_i32_0 = arith.constant 0 : i32
    %c0_i32_1 = arith.constant 0 : i32
    return %arg0, %c0_i32, %c0_i32_0 : i32, i32, i32
  }
  func.func @transform_5(%arg0: i32) -> (i32, i32, i32) {
    %c0_i32 = arith.constant 0 : i32
    %c0_i32_0 = arith.constant 0 : i32
    %c0_i32_1 = arith.constant 0 : i32
    return %arg0, %c0_i32, %c0_i32_0 : i32, i32, i32
  }
}

module attributes {stable_mosaic.version = 11 : i64} {
  func.func @bnrelu_conv_stats_kernel(%arg0: i32, %arg1: memref<1x16x128xf32, #tpu.memory_space<vmem>>, %arg2: memref<1x8xf32, #tpu.memory_space<vmem>>, %arg3: memref<1x8xf32, #tpu.memory_space<vmem>>, %arg4: memref<3x128x128xf32, #tpu.memory_space<vmem>>, %arg5: memref<1x8xf32, #tpu.memory_space<vmem>>, %arg6: memref<1x16x128xf32, #tpu.memory_space<vmem>>, %arg7: memref<1x1x128xf32, #tpu.memory_space<vmem>>, %arg8: memref<1x1x128xf32, #tpu.memory_space<vmem>>) attributes {dimension_semantics = [#tpu.dimension_semantics<parallel>], iteration_bounds = array<i64: 2>, scalar_prefetch = 0 : i64, scratch_operands = 0 : i64, tpu.core_type = #tpu.core_type<tc>, window_params = [{transform_indices = @transform_0, window_bounds = array<i64: 1, 16, 128>}, {pipeline_mode = #tpu.pipeline_mode<synchronous>, transform_indices = @transform_1, window_bounds = array<i64: 1, 8>}, {pipeline_mode = #tpu.pipeline_mode<synchronous>, transform_indices = @transform_2, window_bounds = array<i64: 1, 8>}, {pipeline_mode = #tpu.pipeline_mode<synchronous>, transform_indices = @transform_3, window_bounds = array<i64: 3, 128, 128>}, {pipeline_mode = #tpu.pipeline_mode<synchronous>, transform_indices = @transform_4, window_bounds = array<i64: 1, 8>}, {transform_indices = @transform_5, window_bounds = array<i64: 1, 16, 128>}, {transform_indices = @transform_6, window_bounds = array<i64: 1, 1, 128>}, {transform_indices = @transform_7, window_bounds = array<i64: 1, 1, 128>}]} {
    %c0 = arith.constant 0 : index
    %c0_0 = arith.constant 0 : index
    %c0_1 = arith.constant 0 : index
    %0 = vector.load %arg1[%c0, %c0_0, %c0_1] : memref<1x16x128xf32, #tpu.memory_space<vmem>>, vector<1x16x128xf32>
    %1 = vector.shape_cast %0 : vector<1x16x128xf32> to vector<16x128xf32>
    %2 = tpu.iota {dimensions = array<i32: 1>} : vector<8x128xi32>
    %3 = tpu.iota {dimensions = array<i32: 0>} : vector<8x128xi32>
    %c8_i32 = arith.constant 8 : i32
    %c0_i32 = arith.constant 0 : i32
    %4 = arith.cmpi eq, %c8_i32, %c0_i32 : i32
    %c1_i32 = arith.constant 1 : i32
    %5 = arith.select %4, %c1_i32, %c8_i32 : i32
    %6 = vector.broadcast %5 : i32 to vector<8x128xi32>
    %7 = arith.remsi %2, %6 : vector<8x128xi32>
    %c0_i32_2 = arith.constant 0 : i32
    %8 = vector.broadcast %c0_i32_2 : i32 to vector<8x128xi32>
    %9 = arith.cmpi ne, %7, %8 : vector<8x128xi32>
    %c0_i32_3 = arith.constant 0 : i32
    %10 = vector.broadcast %c0_i32_3 : i32 to vector<8x128xi32>
    %11 = arith.cmpi slt, %7, %10 : vector<8x128xi32>
    %c0_i32_4 = arith.constant 0 : i32
    %12 = arith.cmpi slt, %5, %c0_i32_4 : i32
    %13 = vector.broadcast %12 : i1 to vector<8x128xi1>
    %14 = vector.broadcast %13 : vector<8x128xi1> to vector<8x128xi1>
    %15 = arith.xori %11, %14 : vector<8x128xi1>
    %16 = arith.andi %15, %9 : vector<8x128xi1>
    %17 = vector.broadcast %5 : i32 to vector<8x128xi32>
    %18 = arith.addi %7, %17 : vector<8x128xi32>
    %19 = arith.select %16, %18, %7 : vector<8x128xi1>, vector<8x128xi32>
    %20 = arith.cmpi eq, %19, %3 : vector<8x128xi32>
    %21 = arith.extui %20 : vector<8x128xi1> to vector<8x128xi32>
    %22 = arith.sitofp %21 : vector<8x128xi32> to vector<8x128xf32>
    %c0_5 = arith.constant 0 : index
    %c0_6 = arith.constant 0 : index
    %23 = vector.load %arg2[%c0_5, %c0_6] : memref<1x8xf32, #tpu.memory_space<vmem>>, vector<1x8xf32>
    %cst = arith.constant dense<0.000000e+00> : vector<1x128xf32>
    %24 = tpu.matmul %23, %22, %cst {dimension_numbers = #tpu.dot_dimension_numbers<[1], [0], [0], [1], [0, 0, 1, 1], [], []>} : vector<1x8xf32>, vector<8x128xf32>, vector<1x128xf32> -> vector<1x128xf32>
    %25 = vector.broadcast %24 : vector<1x128xf32> to vector<16x128xf32>
    %26 = arith.mulf %1, %25 : vector<16x128xf32>
    %27 = tpu.iota {dimensions = array<i32: 1>} : vector<8x128xi32>
    %28 = tpu.iota {dimensions = array<i32: 0>} : vector<8x128xi32>
    %c8_i32_7 = arith.constant 8 : i32
    %c0_i32_8 = arith.constant 0 : i32
    %29 = arith.cmpi eq, %c8_i32_7, %c0_i32_8 : i32
    %c1_i32_9 = arith.constant 1 : i32
    %30 = arith.select %29, %c1_i32_9, %c8_i32_7 : i32
    %31 = vector.broadcast %30 : i32 to vector<8x128xi32>
    %32 = arith.remsi %27, %31 : vector<8x128xi32>
    %c0_i32_10 = arith.constant 0 : i32
    %33 = vector.broadcast %c0_i32_10 : i32 to vector<8x128xi32>
    %34 = arith.cmpi ne, %32, %33 : vector<8x128xi32>
    %c0_i32_11 = arith.constant 0 : i32
    %35 = vector.broadcast %c0_i32_11 : i32 to vector<8x128xi32>
    %36 = arith.cmpi slt, %32, %35 : vector<8x128xi32>
    %c0_i32_12 = arith.constant 0 : i32
    %37 = arith.cmpi slt, %30, %c0_i32_12 : i32
    %38 = vector.broadcast %37 : i1 to vector<8x128xi1>
    %39 = vector.broadcast %38 : vector<8x128xi1> to vector<8x128xi1>
    %40 = arith.xori %36, %39 : vector<8x128xi1>
    %41 = arith.andi %40, %34 : vector<8x128xi1>
    %42 = vector.broadcast %30 : i32 to vector<8x128xi32>
    %43 = arith.addi %32, %42 : vector<8x128xi32>
    %44 = arith.select %41, %43, %32 : vector<8x128xi1>, vector<8x128xi32>
    %45 = arith.cmpi eq, %44, %28 : vector<8x128xi32>
    %46 = arith.extui %45 : vector<8x128xi1> to vector<8x128xi32>
    %47 = arith.sitofp %46 : vector<8x128xi32> to vector<8x128xf32>
    %c0_13 = arith.constant 0 : index
    %c0_14 = arith.constant 0 : index
    %48 = vector.load %arg3[%c0_13, %c0_14] : memref<1x8xf32, #tpu.memory_space<vmem>>, vector<1x8xf32>
    %cst_15 = arith.constant dense<0.000000e+00> : vector<1x128xf32>
    %49 = tpu.matmul %48, %47, %cst_15 {dimension_numbers = #tpu.dot_dimension_numbers<[1], [0], [0], [1], [0, 0, 1, 1], [], []>} : vector<1x8xf32>, vector<8x128xf32>, vector<1x128xf32> -> vector<1x128xf32>
    %50 = vector.broadcast %49 : vector<1x128xf32> to vector<16x128xf32>
    %51 = arith.addf %26, %50 : vector<16x128xf32>
    %cst_16 = arith.constant 0.000000e+00 : f32
    %52 = vector.broadcast %cst_16 : f32 to vector<16x128xf32>
    %53 = arith.maximumf %51, %52 : vector<16x128xf32>
    %54 = tpu.iota {dimensions = array<i32: 0>} : vector<16x16xi32>
    %55 = tpu.iota {dimensions = array<i32: 1>} : vector<16x16xi32>
    %c1_i32_17 = arith.constant 1 : i32
    %56 = vector.broadcast %c1_i32_17 : i32 to vector<16x16xi32>
    %57 = arith.subi %54, %56 : vector<16x16xi32>
    %58 = arith.cmpi eq, %55, %57 : vector<16x16xi32>
    %59 = arith.extui %58 : vector<16x16xi1> to vector<16x16xi32>
    %60 = arith.sitofp %59 : vector<16x16xi32> to vector<16x16xf32>
    %c1_i32_18 = arith.constant 1 : i32
    %61 = vector.broadcast %c1_i32_18 : i32 to vector<16x16xi32>
    %62 = arith.addi %54, %61 : vector<16x16xi32>
    %63 = arith.cmpi eq, %55, %62 : vector<16x16xi32>
    %64 = arith.extui %63 : vector<16x16xi1> to vector<16x16xi32>
    %65 = arith.sitofp %64 : vector<16x16xi32> to vector<16x16xf32>
    %cst_19 = arith.constant dense<0.000000e+00> : vector<16x128xf32>
    %66 = tpu.matmul %60, %53, %cst_19 {dimension_numbers = #tpu.dot_dimension_numbers<[1], [0], [0], [1], [0, 0, 1, 1], [], []>} : vector<16x16xf32>, vector<16x128xf32>, vector<16x128xf32> -> vector<16x128xf32>
    %cst_20 = arith.constant dense<0.000000e+00> : vector<16x128xf32>
    %67 = tpu.matmul %65, %53, %cst_20 {dimension_numbers = #tpu.dot_dimension_numbers<[1], [0], [0], [1], [0, 0, 1, 1], [], []>} : vector<16x16xf32>, vector<16x128xf32>, vector<16x128xf32> -> vector<16x128xf32>
    %c0_21 = arith.constant 0 : index
    %c0_22 = arith.constant 0 : index
    %c0_23 = arith.constant 0 : index
    %68 = vector.load %arg4[%c0_21, %c0_22, %c0_23] : memref<3x128x128xf32, #tpu.memory_space<vmem>>, vector<1x128x128xf32>
    %69 = vector.shape_cast %68 : vector<1x128x128xf32> to vector<128x128xf32>
    %cst_24 = arith.constant dense<0.000000e+00> : vector<16x128xf32>
    %70 = tpu.matmul %66, %69, %cst_24 {dimension_numbers = #tpu.dot_dimension_numbers<[1], [0], [0], [1], [0, 0, 1, 1], [], []>} : vector<16x128xf32>, vector<128x128xf32>, vector<16x128xf32> -> vector<16x128xf32>
    %c1 = arith.constant 1 : index
    %c0_25 = arith.constant 0 : index
    %c0_26 = arith.constant 0 : index
    %71 = vector.load %arg4[%c1, %c0_25, %c0_26] : memref<3x128x128xf32, #tpu.memory_space<vmem>>, vector<1x128x128xf32>
    %72 = vector.shape_cast %71 : vector<1x128x128xf32> to vector<128x128xf32>
    %cst_27 = arith.constant dense<0.000000e+00> : vector<16x128xf32>
    %73 = tpu.matmul %53, %72, %cst_27 {dimension_numbers = #tpu.dot_dimension_numbers<[1], [0], [0], [1], [0, 0, 1, 1], [], []>} : vector<16x128xf32>, vector<128x128xf32>, vector<16x128xf32> -> vector<16x128xf32>
    %74 = arith.addf %70, %73 : vector<16x128xf32>
    %c2 = arith.constant 2 : index
    %c0_28 = arith.constant 0 : index
    %c0_29 = arith.constant 0 : index
    %75 = vector.load %arg4[%c2, %c0_28, %c0_29] : memref<3x128x128xf32, #tpu.memory_space<vmem>>, vector<1x128x128xf32>
    %76 = vector.shape_cast %75 : vector<1x128x128xf32> to vector<128x128xf32>
    %cst_30 = arith.constant dense<0.000000e+00> : vector<16x128xf32>
    %77 = tpu.matmul %67, %76, %cst_30 {dimension_numbers = #tpu.dot_dimension_numbers<[1], [0], [0], [1], [0, 0, 1, 1], [], []>} : vector<16x128xf32>, vector<128x128xf32>, vector<16x128xf32> -> vector<16x128xf32>
    %78 = arith.addf %74, %77 : vector<16x128xf32>
    %79 = tpu.iota {dimensions = array<i32: 1>} : vector<8x128xi32>
    %80 = tpu.iota {dimensions = array<i32: 0>} : vector<8x128xi32>
    %c8_i32_31 = arith.constant 8 : i32
    %c0_i32_32 = arith.constant 0 : i32
    %81 = arith.cmpi eq, %c8_i32_31, %c0_i32_32 : i32
    %c1_i32_33 = arith.constant 1 : i32
    %82 = arith.select %81, %c1_i32_33, %c8_i32_31 : i32
    %83 = vector.broadcast %82 : i32 to vector<8x128xi32>
    %84 = arith.remsi %79, %83 : vector<8x128xi32>
    %c0_i32_34 = arith.constant 0 : i32
    %85 = vector.broadcast %c0_i32_34 : i32 to vector<8x128xi32>
    %86 = arith.cmpi ne, %84, %85 : vector<8x128xi32>
    %c0_i32_35 = arith.constant 0 : i32
    %87 = vector.broadcast %c0_i32_35 : i32 to vector<8x128xi32>
    %88 = arith.cmpi slt, %84, %87 : vector<8x128xi32>
    %c0_i32_36 = arith.constant 0 : i32
    %89 = arith.cmpi slt, %82, %c0_i32_36 : i32
    %90 = vector.broadcast %89 : i1 to vector<8x128xi1>
    %91 = vector.broadcast %90 : vector<8x128xi1> to vector<8x128xi1>
    %92 = arith.xori %88, %91 : vector<8x128xi1>
    %93 = arith.andi %92, %86 : vector<8x128xi1>
    %94 = vector.broadcast %82 : i32 to vector<8x128xi32>
    %95 = arith.addi %84, %94 : vector<8x128xi32>
    %96 = arith.select %93, %95, %84 : vector<8x128xi1>, vector<8x128xi32>
    %97 = arith.cmpi eq, %96, %80 : vector<8x128xi32>
    %98 = arith.extui %97 : vector<8x128xi1> to vector<8x128xi32>
    %99 = arith.sitofp %98 : vector<8x128xi32> to vector<8x128xf32>
    %c0_37 = arith.constant 0 : index
    %c0_38 = arith.constant 0 : index
    %100 = vector.load %arg5[%c0_37, %c0_38] : memref<1x8xf32, #tpu.memory_space<vmem>>, vector<1x8xf32>
    %cst_39 = arith.constant dense<0.000000e+00> : vector<1x128xf32>
    %101 = tpu.matmul %100, %99, %cst_39 {dimension_numbers = #tpu.dot_dimension_numbers<[1], [0], [0], [1], [0, 0, 1, 1], [], []>} : vector<1x8xf32>, vector<8x128xf32>, vector<1x128xf32> -> vector<1x128xf32>
    %102 = vector.broadcast %101 : vector<1x128xf32> to vector<16x128xf32>
    %103 = arith.addf %78, %102 : vector<16x128xf32>
    %cst_40 = arith.constant dense<0.000000e+00> : vector<128xf32>
    %104 = vector.multi_reduction <add>, %103, %cst_40 [0] : vector<16x128xf32> to vector<128xf32>
    %105 = vector.shape_cast %104 : vector<128xf32> to vector<1x128xf32>
    %106 = vector.shape_cast %105 : vector<1x128xf32> to vector<1x1x128xf32>
    %c0_41 = arith.constant 0 : index
    %c0_42 = arith.constant 0 : index
    %c0_43 = arith.constant 0 : index
    %107 = vector.load %arg7[%c0_41, %c0_42, %c0_43] : memref<1x1x128xf32, #tpu.memory_space<vmem>>, vector<1x1x128xf32>
    tpu.vector_store %arg7[%c0_41, %c0_42, %c0_43], %106 {strides = array<i32>} : memref<1x1x128xf32, #tpu.memory_space<vmem>>, vector<1x1x128xf32>,
    %108 = arith.mulf %103, %103 : vector<16x128xf32>
    %cst_44 = arith.constant dense<0.000000e+00> : vector<128xf32>
    %109 = vector.multi_reduction <add>, %108, %cst_44 [0] : vector<16x128xf32> to vector<128xf32>
    %110 = vector.shape_cast %109 : vector<128xf32> to vector<1x128xf32>
    %111 = vector.shape_cast %110 : vector<1x128xf32> to vector<1x1x128xf32>
    %c0_45 = arith.constant 0 : index
    %c0_46 = arith.constant 0 : index
    %c0_47 = arith.constant 0 : index
    %112 = vector.load %arg8[%c0_45, %c0_46, %c0_47] : memref<1x1x128xf32, #tpu.memory_space<vmem>>, vector<1x1x128xf32>
    tpu.vector_store %arg8[%c0_45, %c0_46, %c0_47], %111 {strides = array<i32>} : memref<1x1x128xf32, #tpu.memory_space<vmem>>, vector<1x1x128xf32>,
    %113 = vector.shape_cast %103 : vector<16x128xf32> to vector<1x16x128xf32>
    %c0_48 = arith.constant 0 : index
    %c0_49 = arith.constant 0 : index
    %c0_50 = arith.constant 0 : index
    %114 = vector.load %arg6[%c0_48, %c0_49, %c0_50] : memref<1x16x128xf32, #tpu.memory_space<vmem>>, vector<1x16x128xf32>
    tpu.vector_store %arg6[%c0_48, %c0_49, %c0_50], %113 {strides = array<i32>} : memref<1x16x128xf32, #tpu.memory_space<vmem>>, vector<1x16x128xf32>,
    return
  }
  func.func @transform_0(%arg0: i32) -> (i32, i32, i32) {
    %c0_i32 = arith.constant 0 : i32
    %c0_i32_0 = arith.constant 0 : i32
    %c0_i32_1 = arith.constant 0 : i32
    return %arg0, %c0_i32, %c0_i32_0 : i32, i32, i32
  }
  func.func @transform_1(%arg0: i32) -> (i32, i32) {
    %c0_i32 = arith.constant 0 : i32
    %c0_i32_0 = arith.constant 0 : i32
    %c0_i32_1 = arith.constant 0 : i32
    return %c0_i32, %c0_i32_0 : i32, i32
  }
  func.func @transform_2(%arg0: i32) -> (i32, i32) {
    %c0_i32 = arith.constant 0 : i32
    %c0_i32_0 = arith.constant 0 : i32
    %c0_i32_1 = arith.constant 0 : i32
    return %c0_i32, %c0_i32_0 : i32, i32
  }
  func.func @transform_3(%arg0: i32) -> (i32, i32, i32) {
    %c0_i32 = arith.constant 0 : i32
    %c0_i32_0 = arith.constant 0 : i32
    %c0_i32_1 = arith.constant 0 : i32
    %c0_i32_2 = arith.constant 0 : i32
    return %c0_i32, %c0_i32_0, %c0_i32_1 : i32, i32, i32
  }
  func.func @transform_4(%arg0: i32) -> (i32, i32) {
    %c0_i32 = arith.constant 0 : i32
    %c0_i32_0 = arith.constant 0 : i32
    %c0_i32_1 = arith.constant 0 : i32
    return %c0_i32, %c0_i32_0 : i32, i32
  }
  func.func @transform_5(%arg0: i32) -> (i32, i32, i32) {
    %c0_i32 = arith.constant 0 : i32
    %c0_i32_0 = arith.constant 0 : i32
    %c0_i32_1 = arith.constant 0 : i32
    return %arg0, %c0_i32, %c0_i32_0 : i32, i32, i32
  }
  func.func @transform_6(%arg0: i32) -> (i32, i32, i32) {
    %c0_i32 = arith.constant 0 : i32
    %c0_i32_0 = arith.constant 0 : i32
    %c0_i32_1 = arith.constant 0 : i32
    return %arg0, %c0_i32, %c0_i32_0 : i32, i32, i32
  }
  func.func @transform_7(%arg0: i32) -> (i32, i32, i32) {
    %c0_i32 = arith.constant 0 : i32
    %c0_i32_0 = arith.constant 0 : i32
    %c0_i32_1 = arith.constant 0 : i32
    return %arg0, %c0_i32, %c0_i32_0 : i32, i32, i32
  }
}

module attributes {stable_mosaic.version = 11 : i64} {
  func.func @bn_relu_kernel(%arg0: i32, %arg1: memref<1x16x128xf32, #tpu.memory_space<vmem>>, %arg2: memref<1x8xf32, #tpu.memory_space<vmem>>, %arg3: memref<1x8xf32, #tpu.memory_space<vmem>>, %arg4: memref<1x16x128xf32, #tpu.memory_space<vmem>>) attributes {dimension_semantics = [#tpu.dimension_semantics<parallel>], iteration_bounds = array<i64: 2>, scalar_prefetch = 0 : i64, scratch_operands = 0 : i64, tpu.core_type = #tpu.core_type<tc>, window_params = [{transform_indices = @transform_0, window_bounds = array<i64: 1, 16, 128>}, {pipeline_mode = #tpu.pipeline_mode<synchronous>, transform_indices = @transform_1, window_bounds = array<i64: 1, 8>}, {pipeline_mode = #tpu.pipeline_mode<synchronous>, transform_indices = @transform_2, window_bounds = array<i64: 1, 8>}, {transform_indices = @transform_3, window_bounds = array<i64: 1, 16, 128>}]} {
    %c0 = arith.constant 0 : index
    %c0_0 = arith.constant 0 : index
    %c0_1 = arith.constant 0 : index
    %0 = vector.load %arg1[%c0, %c0_0, %c0_1] : memref<1x16x128xf32, #tpu.memory_space<vmem>>, vector<1x16x128xf32>
    %1 = tpu.iota {dimensions = array<i32: 1>} : vector<8x128xi32>
    %2 = tpu.iota {dimensions = array<i32: 0>} : vector<8x128xi32>
    %c8_i32 = arith.constant 8 : i32
    %c0_i32 = arith.constant 0 : i32
    %3 = arith.cmpi eq, %c8_i32, %c0_i32 : i32
    %c1_i32 = arith.constant 1 : i32
    %4 = arith.select %3, %c1_i32, %c8_i32 : i32
    %5 = vector.broadcast %4 : i32 to vector<8x128xi32>
    %6 = arith.remsi %1, %5 : vector<8x128xi32>
    %c0_i32_2 = arith.constant 0 : i32
    %7 = vector.broadcast %c0_i32_2 : i32 to vector<8x128xi32>
    %8 = arith.cmpi ne, %6, %7 : vector<8x128xi32>
    %c0_i32_3 = arith.constant 0 : i32
    %9 = vector.broadcast %c0_i32_3 : i32 to vector<8x128xi32>
    %10 = arith.cmpi slt, %6, %9 : vector<8x128xi32>
    %c0_i32_4 = arith.constant 0 : i32
    %11 = arith.cmpi slt, %4, %c0_i32_4 : i32
    %12 = vector.broadcast %11 : i1 to vector<8x128xi1>
    %13 = vector.broadcast %12 : vector<8x128xi1> to vector<8x128xi1>
    %14 = arith.xori %10, %13 : vector<8x128xi1>
    %15 = arith.andi %14, %8 : vector<8x128xi1>
    %16 = vector.broadcast %4 : i32 to vector<8x128xi32>
    %17 = arith.addi %6, %16 : vector<8x128xi32>
    %18 = arith.select %15, %17, %6 : vector<8x128xi1>, vector<8x128xi32>
    %19 = arith.cmpi eq, %18, %2 : vector<8x128xi32>
    %20 = arith.extui %19 : vector<8x128xi1> to vector<8x128xi32>
    %21 = arith.sitofp %20 : vector<8x128xi32> to vector<8x128xf32>
    %c0_5 = arith.constant 0 : index
    %c0_6 = arith.constant 0 : index
    %22 = vector.load %arg2[%c0_5, %c0_6] : memref<1x8xf32, #tpu.memory_space<vmem>>, vector<1x8xf32>
    %cst = arith.constant dense<0.000000e+00> : vector<1x128xf32>
    %23 = tpu.matmul %22, %21, %cst {dimension_numbers = #tpu.dot_dimension_numbers<[1], [0], [0], [1], [0, 0, 1, 1], [], []>} : vector<1x8xf32>, vector<8x128xf32>, vector<1x128xf32> -> vector<1x128xf32>
    %24 = vector.shape_cast %23 : vector<1x128xf32> to vector<1x1x128xf32>
    %25 = vector.broadcast %24 : vector<1x1x128xf32> to vector<1x16x128xf32>
    %26 = arith.mulf %0, %25 : vector<1x16x128xf32>
    %27 = tpu.iota {dimensions = array<i32: 1>} : vector<8x128xi32>
    %28 = tpu.iota {dimensions = array<i32: 0>} : vector<8x128xi32>
    %c8_i32_7 = arith.constant 8 : i32
    %c0_i32_8 = arith.constant 0 : i32
    %29 = arith.cmpi eq, %c8_i32_7, %c0_i32_8 : i32
    %c1_i32_9 = arith.constant 1 : i32
    %30 = arith.select %29, %c1_i32_9, %c8_i32_7 : i32
    %31 = vector.broadcast %30 : i32 to vector<8x128xi32>
    %32 = arith.remsi %27, %31 : vector<8x128xi32>
    %c0_i32_10 = arith.constant 0 : i32
    %33 = vector.broadcast %c0_i32_10 : i32 to vector<8x128xi32>
    %34 = arith.cmpi ne, %32, %33 : vector<8x128xi32>
    %c0_i32_11 = arith.constant 0 : i32
    %35 = vector.broadcast %c0_i32_11 : i32 to vector<8x128xi32>
    %36 = arith.cmpi slt, %32, %35 : vector<8x128xi32>
    %c0_i32_12 = arith.constant 0 : i32
    %37 = arith.cmpi slt, %30, %c0_i32_12 : i32
    %38 = vector.broadcast %37 : i1 to vector<8x128xi1>
    %39 = vector.broadcast %38 : vector<8x128xi1> to vector<8x128xi1>
    %40 = arith.xori %36, %39 : vector<8x128xi1>
    %41 = arith.andi %40, %34 : vector<8x128xi1>
    %42 = vector.broadcast %30 : i32 to vector<8x128xi32>
    %43 = arith.addi %32, %42 : vector<8x128xi32>
    %44 = arith.select %41, %43, %32 : vector<8x128xi1>, vector<8x128xi32>
    %45 = arith.cmpi eq, %44, %28 : vector<8x128xi32>
    %46 = arith.extui %45 : vector<8x128xi1> to vector<8x128xi32>
    %47 = arith.sitofp %46 : vector<8x128xi32> to vector<8x128xf32>
    %c0_13 = arith.constant 0 : index
    %c0_14 = arith.constant 0 : index
    %48 = vector.load %arg3[%c0_13, %c0_14] : memref<1x8xf32, #tpu.memory_space<vmem>>, vector<1x8xf32>
    %cst_15 = arith.constant dense<0.000000e+00> : vector<1x128xf32>
    %49 = tpu.matmul %48, %47, %cst_15 {dimension_numbers = #tpu.dot_dimension_numbers<[1], [0], [0], [1], [0, 0, 1, 1], [], []>} : vector<1x8xf32>, vector<8x128xf32>, vector<1x128xf32> -> vector<1x128xf32>
    %50 = vector.shape_cast %49 : vector<1x128xf32> to vector<1x1x128xf32>
    %51 = vector.broadcast %50 : vector<1x1x128xf32> to vector<1x16x128xf32>
    %52 = arith.addf %26, %51 : vector<1x16x128xf32>
    %cst_16 = arith.constant 0.000000e+00 : f32
    %53 = vector.broadcast %cst_16 : f32 to vector<1x16x128xf32>
    %54 = arith.maximumf %52, %53 : vector<1x16x128xf32>
    %c0_17 = arith.constant 0 : index
    %c0_18 = arith.constant 0 : index
    %c0_19 = arith.constant 0 : index
    %55 = vector.load %arg4[%c0_17, %c0_18, %c0_19] : memref<1x16x128xf32, #tpu.memory_space<vmem>>, vector<1x16x128xf32>
    tpu.vector_store %arg4[%c0_17, %c0_18, %c0_19], %54 {strides = array<i32>} : memref<1x16x128xf32, #tpu.memory_space<vmem>>, vector<1x16x128xf32>,
    return
  }
  func.func @transform_0(%arg0: i32) -> (i32, i32, i32) {
    %c0_i32 = arith.constant 0 : i32
    %c0_i32_0 = arith.constant 0 : i32
    %c0_i32_1 = arith.constant 0 : i32
    return %arg0, %c0_i32, %c0_i32_0 : i32, i32, i32
  }
  func.func @transform_1(%arg0: i32) -> (i32, i32) {
    %c0_i32 = arith.constant 0 : i32
    %c0_i32_0 = arith.constant 0 : i32
    %c0_i32_1 = arith.constant 0 : i32
    return %c0_i32, %c0_i32_0 : i32, i32
  }
  func.func @transform_2(%arg0: i32) -> (i32, i32) {
    %c0_i32 = arith.constant 0 : i32
    %c0_i32_0 = arith.constant 0 : i32
    %c0_i32_1 = arith.constant 0 : i32
    return %c0_i32, %c0_i32_0 : i32, i32
  }
  func.func @transform_3(%arg0: i32) -> (i32, i32, i32) {
    %c0_i32 = arith.constant 0 : i32
    %c0_i32_0 = arith.constant 0 : i32
    %c0_i32_1 = arith.constant 0 : i32
    return %arg0, %c0_i32, %c0_i32_0 : i32, i32, i32
  }
}

</mosaic_0001>

<bundles_post_ra>
// kernel: decoder_block.3
= control target key start
LH: loop header
LB: loop body
LE: loop exit
PB: predicated region body
PF: predicated region fallthrough
CT: control target
= control target key end

     0   :  { %s1197_s18 = smov 0   ;;  %s1328_s0 = inlined_call_operand.vmem [shape: f32[2,16,64], index: 0, kind: input, shape index: {}]   ;;  %s1329_s1 = inlined_call_operand.vmem [shape: f32[3,64,128], index: 1, kind: input, shape index: {}]   ;;  %s1330_s2 = inlined_call_operand.vmem [shape: f32[1,8], index: 2, kind: input, shape index: {}]   ;;  %s1331_s3 = inlined_call_operand.vmem [shape: f32[2,16,128], index: 3, kind: output, shape index: {0}]   ;;  %s1332_s4 = inlined_call_operand.vmem [shape: f32[2,1,128], index: 4, kind: output, shape index: {1}]   ;;  %s1333_s5 = inlined_call_operand.vmem [shape: f32[2,1,128], index: 5, kind: output, shape index: {2}]  }
   0x1 LB: > { %s921_s19 = sadd.s32 4294967295, %s1162_s18   ;;  %p925_p0 = scmp.ge.s32.totalorder %s1162_s18, 1  ;;  %s1162_s18 = sphi %s1197_s18, %s16_s18  }
   0x2   : > { %p192_p1 = scmp.lt.s32.totalorder %s1162_s18, 3 }
   0x4   : > { %p193_p2 = pnand %p925_p0, %p192_p1 }
   0x5   : > { %p226_p3 = scmp.lt.s32.totalorder (!%p193_p2), %s921_s19, 1  ;;  %v244_v0 = vlaneseq (!%p193_p2)  ;;  %v428_v1 = vld [vmem:[%s1329_s1] sm:$0xff] (!%p193_p2)  ;;  %v429_v2 = vld [vmem:[%s1329_s1 + $0x8] sm:$0xff] (!%p193_p2)  ;;  %v430_v3 = vld [vmem:[%s1329_s1 + $0x10] sm:$0xff] (!%p193_p2)  ;;  %vm265_vm0 = vcmask (!%p193_p2), 130048   ;;  %v1164_v21 = vmov (!%p193_p2), 0.0  }
   0x6   : > { %196 = sbr.rel (%p193_p2) target bundleno = 487 (0x1e7), region = 32  ;;  %v1109_v4 = vpack.c.bf16 (!%p193_p2), %v429_v2, %v428_v1  ;;  %v431_v5 = vld [vmem:[%s1329_s1 + $0x18] sm:$0xff] (!%p193_p2)  ;;  %v432_v9 = vld [vmem:[%s1329_s1 + $0x20] sm:$0xff] (!%p193_p2)  ;;  %v433_v10 = vld [vmem:[%s1329_s1 + $0x28] sm:$0xff] (!%p193_p2)  ;;  %vm445_vm5 = vcmask (!%p193_p2), 523264   ;;  %vm1165_vm7 = vmmov (!%p193_p2), 0  }
   0x7   : > { %v1219_v6 = vshrl.u32 (!%p193_p2), %v244_v0, 7  ;;  %v1221_v7 = vand.u32 (!%p193_p2), 127, %v244_v0  ;;  %v1113_v8 = vpack.c.bf16 (!%p193_p2), %v431_v5, %v430_v3  ;;  %v1117_v14 = vpack.c.bf16 (!%p193_p2), %v433_v10, %v432_v9  ;;  %v434_v15 = vld [vmem:[%s1329_s1 + $0x30] sm:$0xff] (!%p193_p2)  ;;  %v435_v19 = vld [vmem:[%s1329_s1 + $0x38] sm:$0xff] (!%p193_p2)  ;;  %v940_v24 = vld [vmem:[%s1329_s1 + $0x40] sm:$0xff] (!%p193_p2) }
   0x8   : > { %1110 = vmatprep.subr.bf16.mxu0 (!%p193_p2), %v1109_v4  ;;  %v941_v25 = vld [vmem:[%s1329_s1 + $0x48] sm:$0xff] (!%p193_p2)  ;;  %v1121_v26 = vpack.c.bf16 (!%p193_p2), %v435_v19, %v434_v15  ;;  %v942_v31 = vld [vmem:[%s1329_s1 + $0x50] sm:$0xff] (!%p193_p2)  ;;  %v943_v32 = vld [vmem:[%s1329_s1 + $0x58] sm:$0xff] (!%p193_p2)  ;;  %v1166_v44 = vmov (!%p193_p2), 1.0   ;;  %vm716_vm8 = vcmask (!%p193_p2), 64512  }
   0x9   : > { %v930_v11 = vadd.s32 (!%p193_p2), 4294967295, %v1219_v6  ;;  %v246_v12 = vadd.s32 (!%p193_p2), 8, %v1219_v6  ;;  %v257_v13 = vadd.s32 (!%p193_p2), 1, %v1219_v6  ;;  %1112 = vmatpush3.bf16.msra.mxu0 (!%p193_p2), %v1109_v4  ;;  %v1093_v29 = vpack.c.bf16 (!%p193_p2), %v941_v25, %v940_v24  ;;  %v952_v33 = vld [vmem:[%s1329_s1 + $0x80] sm:$0xff] (!%p193_p2)  ;;  %v953_v35 = vld [vmem:[%s1329_s1 + $0x88] sm:$0xff] (!%p193_p2)  ;;  %v946_v40 = vld [vmem:[%s1329_s1 + $0x70] sm:$0xff] (!%p193_p2) }
   0xa   : > { %1114 = vmatprep.subr.bf16.mxu0 (!%p193_p2), %v1113_v8  ;;  %v1097_v34 = vpack.c.bf16 (!%p193_p2), %v943_v32, %v942_v31  ;;  %v1125_v36 = vpack.c.bf16 (!%p193_p2), %v953_v35, %v952_v33  ;;  %v944_v37 = vld [vmem:[%s1329_s1 + $0x60] sm:$0xff] (!%p193_p2)  ;;  %v945_v38 = vld [vmem:[%s1329_s1 + $0x68] sm:$0xff] (!%p193_p2)  ;;  %v947_v41 = vld [vmem:[%s1329_s1 + $0x78] sm:$0xff] (!%p193_p2)  ;;  %v704_v43 = vand.u32 (!%p193_p2), 7, %v1221_v7  ;;  %v792_v63 = vsub.s32 (!%p193_p2), 0, %v1219_v6 }
   0xb   : > { %vm251_vm1 = vcmp.eq.s32.totalorder (!%p193_p2), %v1221_v7, %v930_v11  ;;  %v931_v18 = vadd.s32 (!%p193_p2), 4294967295, %v246_v12  ;;  %v258_v23 = vadd.s32 (!%p193_p2), 1, %v246_v12  ;;  %vm259_vm3 = vcmp.eq.s32.totalorder (!%p193_p2), %v1221_v7, %v257_v13  ;;  %v715_v45 = vld [vmem:[%s1330_s2] sm:$0x1] (!%p193_p2)  ;;  %v954_v46 = vld [vmem:[%s1329_s1 + $0x90] sm:$0xff] (!%p193_p2)  ;;  %v955_v47 = vld [vmem:[%s1329_s1 + $0x98] sm:$0xff] (!%p193_p2) }
   0xc   : > { %v932_v22 = vsel (!%p193_p2), %vm251_vm1, 1.0, %v1164_v21  ;;  %v934_v28 = vsel (!%p193_p2), %vm259_vm3, 1.0, %v1164_v21  ;;  %v1101_v39 = vpack.c.bf16 (!%p193_p2), %v945_v38, %v944_v37  ;;  %v1105_v42 = vpack.c.bf16 (!%p193_p2), %v947_v41, %v946_v40  ;;  %v956_v51 = vld [vmem:[%s1329_s1 + $0xa0] sm:$0xff] (!%p193_p2)  ;;  %v957_v52 = vld [vmem:[%s1329_s1 + $0xa8] sm:$0xff] (!%p193_p2)  ;;  %v958_v56 = vld [vmem:[%s1329_s1 + $0xb0] sm:$0xff] (!%p193_p2) }
   0xd   : > { %s1335_s19 = smov (!%p226_p3, %s921_s19), 1  ;;  %1013 = vmatprep.mubr.msk.f32.mxu1 %vm265_vm0, %v932_v22  ;;  %vm252_vm2 = vcmp.eq.s32.totalorder %v1221_v7, %v931_v18  ;;  %1116 = vmatpush3.bf16.msra.mxu0 %v1113_v8  ;;  %vm260_vm4 = vcmp.eq.s32.totalorder %v1221_v7, %v258_v23  ;;  %vm712_vm6 = vcmp.eq.s32.totalorder %v704_v43, %v1219_v6  ;;  %v959_v57 = vld [vmem:[%s1329_s1 + $0xb8] sm:$0xff] }
   0xe   : > { %s967_s7 = sshll.u32 %s1335_s19, 4  ;;  %1118 = vmatprep.subr.bf16.mxu0 %v1117_v14  ;;  %v933_v27 = vsel %vm252_vm2, 1.0, %v1164_v21  ;;  %v935_v30 = vsel %vm260_vm4, 1.0, %v1164_v21  ;;  %v1129_v50 = vpack.c.bf16 %v955_v47, %v954_v46  ;;  %v1133_v54 = vpack.c.bf16 %v957_v52, %v956_v51  ;;  %s238_s9 = scalar_lea.vmem %s1332_s4, %s1335_s19 }
   0xf   : > { %s230_s10 = scalar_lea.vmem %s1328_s0, %s967_s7  ;;  %v1137_v58 = vpack.c.bf16 %v959_v57, %v958_v56  ;;  %s235_s6 = scalar_lea.vmem %s1331_s3, %s967_s7 }
  0x10   : > { %v242_v16 = vld [vmem:[%s230_s10] sm:$0xff]  ;;  %v243_v17 = vld [vmem:[%s230_s10 + $0x8] sm:$0xff]  ;;  %s241_s12 = scalar_lea.vmem %s1333_s5, %s1335_s19 }
  0x11   : > { %v1085_v20 = vpack.c.bf16 %v243_v17, %v242_v16  ;;  %1120 = vmatpush3.bf16.msra.mxu0 %v1117_v14 }
  0x12   : > { %1122 = vmatprep.subr.bf16.mxu0 %v1121_v26 }
  0x13   : > { %1086 = vmatprep.subr.bf16.mxu1 %v1085_v20 }
  0x14   : > { %1088 = vmatpush3.bf16.msra.mxu1 %v1085_v20 }
  0x15   : > { %1090 = vmatprep.subr.bf16.mxu1 %v1085_v20  ;;  %1124 = vmatpush3.bf16.msra.mxu0 %v1121_v26 }
  0x16   : > { %1126 = vmatprep.subr.bf16.mxu0 %v1125_v36 }
  0x17   : > { %1014 = vmatmul.mubr.msk.f32.vlgmr.msra.gmra.mrb[0].mxu1 %vm265_vm0, %v933_v27 }
  0x18   : > { %1092 = vmatpush3.bf16.msra.mxu1 %v1085_v20  ;;  %1020 = vmatprep.mubr.msk.f32.mxu1 %vm265_vm0, %v934_v28 }
  0x19   : > { %1094 = vmatprep.subr.bf16.mxu1 %v1093_v29 }
  0x1b   : > { %1021 = vmatmul.mubr.msk.f32.vlgmr.msra.gmra.mrb[2].mxu1 %vm265_vm0, %v935_v30 }
  0x1c   : > { %1096 = vmatpush3.bf16.msra.mxu1 %v1093_v29  ;;  %1039 = vmatprep.mubr.msk.f32.mxu1 %vm445_vm5, %v242_v16 }
  0x1d   : > { %1098 = vmatprep.subr.bf16.mxu1 %v1097_v34 }
  0x20   : > { %1100 = vmatpush3.bf16.msra.mxu1 %v1097_v34 }
  0x21   : > { %1102 = vmatprep.subr.bf16.mxu1 %v1101_v39 }
  0x24   : > { %1104 = vmatpush3.bf16.msra.mxu1 %v1101_v39 }
  0x25   : > { %1106 = vmatprep.subr.bf16.mxu1 %v1105_v42 }
  0x28   : > { %1108 = vmatpush3.bf16.msra.mxu1 %v1105_v42 }
  0x29   : > { %1080 = vmatprep.subr.mxu1 %v1164_v21 }
  0x2b   : > { %1040 = vmatmul.mubr.msk.f32.vlgmr.msra.gmra.mrb[4].mxu1 %vm445_vm5, %v243_v17 }
  0x2c   : > { %1082 = vmatprep.mubr.msk.f32.mxu1 %vm1165_vm7, %v1164_v21  ;;  %1081 = vmatpush3.msk.msra.mxu1 %vm712_vm6, %v1166_v44 }
  0x2f   : > { %1083 = vmatmul.mubr.msk.f32.vlgmr.msra.gmra.mrb[6].mxu1 %vm716_vm8, %v715_v45 }
  0xea   : > { %v1015_v48 = vpop.f32.mrb[0].mxu1 }
  0xeb   : > { %v338_v49 = vpop.f32.mrb[1].mxu1 }
  0xec   : > { %1058 = vmatprep.mubr.msk.f32.mxu0 %vm445_vm5, %v338_v49 }
  0xed   : > { %1059 = vmatmul.mubr.msk.f32.vlgmr.msra.gmra.mrb[0].mxu0 %vm445_vm5, %v1015_v48 }
  0xee   : > { %1128 = vmatpush3.bf16.msra.mxu0 %v1125_v36  ;;  %v1022_v53 = vpop.f32.mrb[2].mxu1 }
  0xef   : > { %1130 = vmatprep.subr.bf16.mxu0 %v1129_v50  ;;  %v419_v55 = vpop.f32.mrb[3].mxu1 }
  0xf0   : > { %1077 = vmatprep.mubr.msk.f32.mxu0 %vm445_vm5, %v419_v55 }
  0xf2   : > { %1132 = vmatpush3.bf16.msra.mxu0 %v1129_v50 }
  0xf3   : > { %1134 = vmatprep.subr.bf16.mxu0 %v1133_v54 }
  0xf6   : > { %1136 = vmatpush3.bf16.msra.mxu0 %v1133_v54 }
  0xf7   : > { %1138 = vmatprep.subr.bf16.mxu0 %v1137_v58 }
  0xfa   : > { %1140 = vmatpush3.bf16.msra.mxu0 %v1137_v58 }
  0xfd   : > { %1078 = vmatmul.mubr.msk.f32.vlgmr.msra.gmra.mrb[0].mxu0 %vm445_vm5, %v1022_v53 }
  0xfe   : > { %v1041_v59 = vpop.f32.mrb[4].mxu1 }
  0xff   : > { %v518_v60 = vpop.f32.mrb[5].mxu1 }
 0x102   : > { %v786_v61 = vpop.f32.mrb[6].mxu1 }
 0x103   : > { %v1084_v62 = vpop.f32.mrb[7].mxu1  ;;  %v793_v0 = vrot.slane %v786_v61, %v792_v63 }
 0x1d0   : > { %v1079_v1 = vpop.f32.mrb[0].mxu0 }
 0x1d1   : > { %v1141_v2 = vadd.f32 %v1079_v1, %v1041_v59  ;;  %v689_v3 = vpop.f32.mrb[1].mxu0 }
 0x1d2   : > { %v1142_v4 = vadd.f32 %v689_v3, %v518_v60 }
 0x1d3   : > { %v795_v5 = vadd.f32 %v1141_v2, %v793_v0 }
 0x1d4   : > { %v794_v7 = vadd.f32 %v1142_v4, %v793_v0 }
 0x1d5   : > { %v805_v8 = vmul.f32 %v795_v5, %v795_v5  ;;  %815 = vst [vmem:[%s235_s6 + $0x8] sm:$0xff] %v795_v5 }
 0x1d6   : > { %v796_v9 = vadd.f32 %v795_v5, %v794_v7  ;;  %v804_v10 = vmul.f32 %v794_v7, %v794_v7  ;;  %814 = vst [vmem:[%s235_s6] sm:$0xff] %v794_v7 }
 0x1d8   : > { %v797_v6 = vrot.slane %v796_v9, 4  ;;  %v806_v11 = vadd.f32 %v805_v8, %v804_v10 }
 0x1da   : > { %v798_v12 = vadd.f32 %v797_v6, %v796_v9  ;;  %v807_v13 = vrot.slane %v806_v11, 4 }
 0x1dc   : > { %v799_v14 = vrot.slane %v798_v12, 2  ;;  %v808_v15 = vadd.f32 %v807_v13, %v806_v11 }
 0x1de   : > { %v800_v16 = vadd.f32 %v799_v14, %v798_v12  ;;  %v809_v17 = vrot.slane %v808_v15, 2 }
 0x1e0   : > { %v801_v18 = vrot.slane %v800_v16, 1  ;;  %v810_v19 = vadd.f32 %v809_v17, %v808_v15 }
 0x1e2   : > { %v802_v20 = vadd.f32 %v801_v18, %v800_v16  ;;  %v811_v21 = vrot.slane %v810_v19, 1 }
 0x1e4   : > { %803 = vst [vmem:[%s238_s9] sm:$0x1] %v802_v20  ;;  %v812_v22 = vadd.f32 %v811_v21, %v810_v19 }
 0x1e6   : > { %813 = vst [vmem:[%s241_s12] sm:$0x1] %v812_v22 }
 0x1e7 PF: > { %s16_s18 = sadd.s32 1, %s1162_s18  }
 0x1e8   : > { %p13_p4 = scmp.ge.s32.totalorder %s16_s18, 4  }
 0x1ea   :  { %15 = sbr.rel (!%p13_p4) target bundleno = 1 (0x1), region = 88 }

// kernel: decoder_block.4
= control target key start
LH: loop header
LB: loop body
LE: loop exit
PB: predicated region body
PF: predicated region fallthrough
CT: control target
= control target key end

     0   :  { %s1576_s24 = smov 0   ;;  %s1817_s0 = inlined_call_operand.vmem [shape: f32[2,16,128], index: 0, kind: input, shape index: {}]   ;;  %s1818_s1 = inlined_call_operand.vmem [shape: f32[1,8], index: 1, kind: input, shape index: {}]   ;;  %s1819_s2 = inlined_call_operand.vmem [shape: f32[1,8], index: 2, kind: input, shape index: {}]   ;;  %s1820_s3 = inlined_call_operand.vmem [shape: f32[3,128,128], index: 3, kind: input, shape index: {}]   ;;  %s1821_s4 = inlined_call_operand.vmem [shape: f32[1,8], index: 4, kind: input, shape index: {}]   ;;  %s1822_s5 = inlined_call_operand.vmem [shape: f32[2,16,128], index: 5, kind: output, shape index: {0}]   ;;  %s1823_s6 = inlined_call_operand.vmem [shape: f32[2,1,128], index: 6, kind: output, shape index: {1}]   ;;  %s1824_s7 = inlined_call_operand.vmem [shape: f32[2,1,128], index: 7, kind: output, shape index: {2}]  }
   0x1 LB: > { %s1142_s25 = sadd.s32 4294967295, %s1531_s24   ;;  %p1146_p0 = scmp.ge.s32.totalorder %s1531_s24, 1  ;;  %s1531_s24 = sphi %s1576_s24, %s18_s24  }
   0x2   : > { %p242_p1 = scmp.lt.s32.totalorder %s1531_s24, 3 }
   0x4   : > { %p243_p2 = pnand %p1146_p0, %p242_p1 }
   0x5   : > { %v298_v0 = vlaneseq (!%p243_p2)  ;;  %v1533_v1 = vmov (!%p243_p2), 0.0   ;;  %vm1534_vm0 = vmmov (!%p243_p2), 0   ;;  %v317_v5 = vld [vmem:[%s1818_s1] sm:$0x1] (!%p243_p2)  ;;  %vm318_vm1 = vcmask (!%p243_p2), 64512   ;;  %v661_v12 = vld [vmem:[%s1820_s3 + $0x8] sm:$0xff] (!%p243_p2) }
   0x6   : > { %246 = sbr.rel (%p243_p2) target bundleno = 721 (0x2d1), region = 40  ;;  %1272 = vmatprep.subr.mxu1 (!%p243_p2), %v1533_v1  ;;  %1274 = vmatprep.mubr.msk.f32.mxu1 (!%p243_p2), %vm1534_vm0, %v1533_v1  ;;  %v1535_v7 = vmov (!%p243_p2), 1.0   ;;  %v398_v8 = vld [vmem:[%s1819_s2] sm:$0x1] (!%p243_p2)  ;;  %vm497_vm4 = vcmask (!%p243_p2), 130048   ;;  %v662_v13 = vld [vmem:[%s1820_s3 + $0x10] sm:$0xff] (!%p243_p2) }
   0x7   : > { %v1587_v2 = vand.u32 (!%p243_p2), 127, %v298_v0  ;;  %v1589_v3 = vshrl.u32 (!%p243_p2), %v298_v0, 7  ;;  %v660_v11 = vld [vmem:[%s1820_s3] sm:$0xff] (!%p243_p2)  ;;  %v663_v15 = vld [vmem:[%s1820_s3 + $0x18] sm:$0xff] (!%p243_p2)  ;;  %v665_v18 = vld [vmem:[%s1820_s3 + $0x28] sm:$0xff] (!%p243_p2)  ;;  %p280_p3 = scmp.lt.s32.totalorder (!%p243_p2), %s1142_s25, 1 }
   0x8   : > { %v1446_v14 = vpack.c.bf16 (!%p243_p2), %v661_v12, %v660_v11  ;;  %v1450_v16 = vpack.c.bf16 (!%p243_p2), %v663_v15, %v662_v13  ;;  %v664_v17 = vld [vmem:[%s1820_s3 + $0x20] sm:$0xff] (!%p243_p2)  ;;  %v666_v20 = vld [vmem:[%s1820_s3 + $0x30] sm:$0xff] (!%p243_p2)  ;;  %v667_v21 = vld [vmem:[%s1820_s3 + $0x38] sm:$0xff] (!%p243_p2) }
   0x9   : > { %v306_v4 = vand.u32 (!%p243_p2), 7, %v1587_v2  ;;  %v1156_v9 = vadd.s32 (!%p243_p2), 4294967295, %v1589_v3  ;;  %v1454_v19 = vpack.c.bf16 (!%p243_p2), %v665_v18, %v664_v17  ;;  %v1458_v22 = vpack.c.bf16 (!%p243_p2), %v667_v21, %v666_v20  ;;  %v668_v23 = vld [vmem:[%s1820_s3 + $0x40] sm:$0xff] (!%p243_p2)  ;;  %v669_v24 = vld [vmem:[%s1820_s3 + $0x48] sm:$0xff] (!%p243_p2)  ;;  %v670_v26 = vld [vmem:[%s1820_s3 + $0x50] sm:$0xff] (!%p243_p2) }
   0xa   : > { %1447 = vmatprep.subr.bf16.mxu0 (!%p243_p2), %v1446_v14  ;;  %v1462_v25 = vpack.c.bf16 (!%p243_p2), %v669_v24, %v668_v23  ;;  %v671_v27 = vld [vmem:[%s1820_s3 + $0x58] sm:$0xff] (!%p243_p2)  ;;  %v672_v29 = vld [vmem:[%s1820_s3 + $0x60] sm:$0xff] (!%p243_p2)  ;;  %v673_v30 = vld [vmem:[%s1820_s3 + $0x68] sm:$0xff] (!%p243_p2)  ;;  %v1674_v35 = vsub.s32 (!%p243_p2), 0, %v1589_v3  ;;  %v480_v41 = vadd.s32 (!%p243_p2), 8, %v1589_v3  ;;  %v489_v50 = vadd.s32 (!%p243_p2), 1, %v1589_v3 }
   0xb   : > { %vm1596_vm2 = vcmp.eq.s32.totalorder (!%p243_p2), %v306_v4, %v1589_v3  ;;  %vm483_vm3 = vcmp.eq.s32.totalorder (!%p243_p2), %v1587_v2, %v1156_v9  ;;  %1449 = vmatpush3.bf16.msra.mxu0 (!%p243_p2), %v1446_v14  ;;  %v1466_v28 = vpack.c.bf16 (!%p243_p2), %v671_v27, %v670_v26  ;;  %v1470_v31 = vpack.c.bf16 (!%p243_p2), %v673_v30, %v672_v29  ;;  %v674_v32 = vld [vmem:[%s1820_s3 + $0x70] sm:$0xff] (!%p243_p2)  ;;  %v675_v33 = vld [vmem:[%s1820_s3 + $0x78] sm:$0xff] (!%p243_p2)  ;;  %v1166_v55 = vld [vmem:[%s1820_s3 + $0x80] sm:$0xff] (!%p243_p2) }
   0xc   : > { %1273 = vmatpush3.msk.msra.mxu1 (!%p243_p2), %vm1596_vm2, %v1535_v7  ;;  %v1158_v10 = vsel (!%p243_p2), %vm483_vm3, 1.0, %v1533_v1  ;;  %1451 = vmatprep.subr.bf16.mxu0 (!%p243_p2), %v1450_v16  ;;  %v1474_v34 = vpack.c.bf16 (!%p243_p2), %v675_v33, %v674_v32  ;;  %v1157_v49 = vadd.s32 (!%p243_p2), 4294967295, %v480_v41  ;;  %v490_v54 = vadd.s32 (!%p243_p2), 1, %v480_v41  ;;  %v1167_v56 = vld [vmem:[%s1820_s3 + $0x88] sm:$0xff] (!%p243_p2)  ;;  %v1168_v60 = vld [vmem:[%s1820_s3 + $0x90] sm:$0xff] (!%p243_p2)  ;;  %v1169_v61 = vld [vmem:[%s1820_s3 + $0x98] sm:$0xff] (!%p243_p2) }
   0xd   : > { %1275 = vmatmul.mubr.msk.f32.vlgmr.msra.gmra.mrb[0].mxu1 %vm318_vm1, %v317_v5  ;;  %1277 = vmatprep.subr.mxu1 %v1533_v1  ;;  %s1828_s25 = smov (!%p280_p3, %s1142_s25), 1  ;;  %vm491_vm6 = vcmp.eq.s32.totalorder %v1587_v2, %v489_v50  ;;  %v1414_v59 = vpack.c.bf16 %v1167_v56, %v1166_v55  ;;  %v1418_v63 = vpack.c.bf16 %v1169_v61, %v1168_v60  ;;  %v1170_v0 = vld [vmem:[%s1820_s3 + $0xa0] sm:$0xff]  ;;  %v1172_v4 = vld [vmem:[%s1820_s3 + $0xb0] sm:$0xff]  ;;  %v1173_v5 = vld [vmem:[%s1820_s3 + $0xb8] sm:$0xff] }
   0xe   : > { %1278 = vmatpush3.msk.msra.mxu1 %vm1596_vm2, %v1535_v7  ;;  %1279 = vmatprep.mubr.msk.f32.mxu1 %vm1534_vm0, %v1533_v1  ;;  %s1202_s18 = sshll.u32 %s1828_s25, 4  ;;  %vm484_vm5 = vcmp.eq.s32.totalorder %v1587_v2, %v1157_v49  ;;  %v1160_v58 = vsel %vm491_vm6, 1.0, %v1533_v1  ;;  %vm492_vm7 = vcmp.eq.s32.totalorder %v1587_v2, %v490_v54  ;;  %v1171_v2 = vld [vmem:[%s1820_s3 + $0xa8] sm:$0xff]  ;;  %v1174_v9 = vld [vmem:[%s1820_s3 + $0xc0] sm:$0xff]  ;;  %v1176_v12 = vld [vmem:[%s1820_s3 + $0xd0] sm:$0xff]  ;;  %s292_s11 = scalar_lea.vmem %s1823_s6, %s1828_s25 }
   0xf   : > { %1453 = vmatpush3.bf16.msra.mxu0 %v1450_v16  ;;  %s284_s21 = scalar_lea.vmem %s1817_s0, %s1202_s18  ;;  %v1159_v57 = vsel %vm484_vm5, 1.0, %v1533_v1  ;;  %v1161_v62 = vsel %vm492_vm7, 1.0, %v1533_v1  ;;  %v1422_v3 = vpack.c.bf16 %v1171_v2, %v1170_v0  ;;  %v1177_v13 = vld [vmem:[%s1820_s3 + $0xd8] sm:$0xff]  ;;  %v1178_v15 = vld [vmem:[%s1820_s3 + $0xe0] sm:$0xff]  ;;  %v1179_v16 = vld [vmem:[%s1820_s3 + $0xe8] sm:$0xff]  ;;  %s289_s9 = scalar_lea.vmem %s1822_s5, %s1202_s18 }
  0x10   : > { %1455 = vmatprep.subr.bf16.mxu0 %v1454_v19  ;;  %v296_v39 = vld [vmem:[%s284_s21] sm:$0xff]  ;;  %v297_v40 = vld [vmem:[%s284_s21 + $0x8] sm:$0xff]  ;;  %v1434_v14 = vpack.c.bf16 %v1177_v13, %v1176_v12  ;;  %v1438_v17 = vpack.c.bf16 %v1179_v16, %v1178_v15  ;;  %v1180_v18 = vld [vmem:[%s1820_s3 + $0xf0] sm:$0xff]  ;;  %s295_s14 = scalar_lea.vmem %s1824_s7, %s1828_s25 }
  0x11   : > { %1280 = vmatmul.mubr.msk.f32.vlgmr.msra.gmra.mrb[2].mxu1 %vm318_vm1, %v398_v8  ;;  %v1426_v8 = vpack.c.bf16 %v1173_v5, %v1172_v4  ;;  %v1182_v21 = vld [vmem:[%s1820_s3 + $0x100] sm:$0xff]  ;;  %v1185_v6 = vld [vmem:[%s1820_s3 + $0x118] sm:$0xff]  ;;  %v1188_v32 = vld [vmem:[%s1820_s3 + $0x130] sm:$0xff] }
  0x12   : > { %1286 = vmatprep.mubr.msk.f32.mxu1 %vm497_vm4, %v1158_v10  ;;  %v1175_v10 = vld [vmem:[%s1820_s3 + $0xc8] sm:$0xff]  ;;  %v937_v24 = vld [vmem:[%s1821_s4] sm:$0x1]  ;;  %v1189_v33 = vld [vmem:[%s1820_s3 + $0x138] sm:$0xff] }
  0x13   : > { %1457 = vmatpush3.bf16.msra.mxu0 %v1454_v19  ;;  %v1430_v11 = vpack.c.bf16 %v1175_v10, %v1174_v9  ;;  %v1181_v19 = vld [vmem:[%s1820_s3 + $0xf8] sm:$0xff]  ;;  %v1186_v27 = vld [vmem:[%s1820_s3 + $0x120] sm:$0xff] }
  0x14   : > { %1459 = vmatprep.subr.bf16.mxu0 %v1458_v22  ;;  %v1442_v20 = vpack.c.bf16 %v1181_v19, %v1180_v18 }
  0x17   : > { %1461 = vmatpush3.bf16.msra.mxu0 %v1458_v22  ;;  %v1183_v22 = vld [vmem:[%s1820_s3 + $0x108] sm:$0xff] }
  0x18   : > { %1463 = vmatprep.subr.bf16.mxu0 %v1462_v25  ;;  %v1478_v23 = vpack.c.bf16 %v1183_v22, %v1182_v21 }
  0x1b   : > { %1465 = vmatpush3.bf16.msra.mxu0 %v1462_v25 }
  0x1c   : > { %1467 = vmatprep.subr.bf16.mxu0 %v1466_v28 }
  0x1f   : > { %1469 = vmatpush3.bf16.msra.mxu0 %v1466_v28  ;;  %v1187_v28 = vld [vmem:[%s1820_s3 + $0x128] sm:$0xff] }
  0x20   : > { %1471 = vmatprep.subr.bf16.mxu0 %v1470_v31  ;;  %v1486_v30 = vpack.c.bf16 %v1187_v28, %v1186_v27 }
  0x23   : > { %1473 = vmatpush3.bf16.msra.mxu0 %v1470_v31 }
  0x24   : > { %1475 = vmatprep.subr.bf16.mxu0 %v1474_v34 }
  0x27   : > { %1477 = vmatpush3.bf16.msra.mxu0 %v1474_v34  ;;  %v1490_v34 = vpack.c.bf16 %v1189_v33, %v1188_v32 }
  0x28   : > { %1479 = vmatprep.subr.bf16.mxu0 %v1478_v23 }
  0xe0   : > { %v388_v36 = vpop.f32.mrb[0].mxu1 }
  0xe1   : > { %v395_v37 = vrot.slane %v388_v36, %v1674_v35  ;;  %v1276_v38 = vpop.f32.mrb[1].mxu1  ;;  %v1190_v36 = vld [vmem:[%s1820_s3 + $0x140] sm:$0xff] }
  0xe3   : > { %v396_v43 = vmul.f32 %v395_v37, %v296_v39  ;;  %v397_v44 = vmul.f32 %v395_v37, %v297_v40  ;;  %v1191_v37 = vld [vmem:[%s1820_s3 + $0x148] sm:$0xff]  ;;  %v1192_v39 = vld [vmem:[%s1820_s3 + $0x150] sm:$0xff]  ;;  %v1193_v40 = vld [vmem:[%s1820_s3 + $0x158] sm:$0xff] }
  0xe4   : > { %v468_v42 = vpop.f32.mrb[2].mxu1  ;;  %v1494_v38 = vpack.c.bf16 %v1191_v37, %v1190_v36  ;;  %v1498_v41 = vpack.c.bf16 %v1193_v40, %v1192_v39 }
  0xe5   : > { %v475_v45 = vrot.slane %v468_v42, %v1674_v35  ;;  %v1281_v46 = vpop.f32.mrb[3].mxu1  ;;  %v1194_v42 = vld [vmem:[%s1820_s3 + $0x160] sm:$0xff] }
  0xe6   : > { %v1197_v46 = vld [vmem:[%s1820_s3 + $0x178] sm:$0xff] }
  0xe7   : > { %v476_v47 = vadd.f32 %v475_v45, %v396_v43  ;;  %v477_v48 = vadd.f32 %v475_v45, %v397_v44  ;;  %v1195_v43 = vld [vmem:[%s1820_s3 + $0x168] sm:$0xff]  ;;  %v1196_v45 = vld [vmem:[%s1820_s3 + $0x170] sm:$0xff] }
  0xe8   : > { %v1502_v44 = vpack.c.bf16 %v1195_v43, %v1194_v42 }
  0xe9   : > { %v478_v51 = vmax.f32 %v476_v47, 0.0  ;;  %v479_v52 = vmax.f32 %v477_v48, 0.0  ;;  %v1506_v47 = vpack.c.bf16 %v1197_v46, %v1196_v45 }
  0xeb   : > { %v1406_v53 = vpack.c.bf16 %v479_v52, %v478_v51 }
  0xed   : > { %1407 = vmatprep.subr.bf16.mxu1 %v1406_v53 }
  0xee   : > { %1409 = vmatpush3.bf16.msra.mxu1 %v1406_v53 }
  0xef   : > { %1411 = vmatprep.subr.bf16.mxu1 %v1406_v53 }
  0xf1   : > { %1287 = vmatmul.mubr.msk.f32.vlgmr.msra.gmra.mrb[4].mxu1 %vm497_vm4, %v1159_v57 }
  0xf2   : > { %1413 = vmatpush3.bf16.msra.mxu1 %v1406_v53  ;;  %1293 = vmatprep.mubr.msk.f32.mxu1 %vm497_vm4, %v1160_v58 }
  0xf3   : > { %1415 = vmatprep.subr.bf16.mxu1 %v1414_v59 }
  0xf5   : > { %1294 = vmatmul.mubr.msk.f32.vlgmr.msra.gmra.mrb[6].mxu1 %vm497_vm4, %v1161_v62 }
  0xf6   : > { %1417 = vmatpush3.bf16.msra.mxu1 %v1414_v59  ;;  %1328 = vmatprep.mubr.f32.mxu1 %v478_v51 }
  0xf7   : > { %1419 = vmatprep.subr.bf16.mxu1 %v1418_v63 }
  0xfa   : > { %1421 = vmatpush3.bf16.msra.mxu1 %v1418_v63 }
  0xfb   : > { %1423 = vmatprep.subr.bf16.mxu1 %v1422_v3 }
  0xfe   : > { %1425 = vmatpush3.bf16.msra.mxu1 %v1422_v3 }
  0xff   : > { %1427 = vmatprep.subr.bf16.mxu1 %v1426_v8 }
 0x102   : > { %1429 = vmatpush3.bf16.msra.mxu1 %v1426_v8 }
 0x103   : > { %1431 = vmatprep.subr.bf16.mxu1 %v1430_v11 }
 0x106   : > { %1433 = vmatpush3.bf16.msra.mxu1 %v1430_v11 }
 0x107   : > { %1435 = vmatprep.subr.bf16.mxu1 %v1434_v14 }
 0x10a   : > { %1437 = vmatpush3.bf16.msra.mxu1 %v1434_v14 }
 0x10b   : > { %1439 = vmatprep.subr.bf16.mxu1 %v1438_v17 }
 0x10e   : > { %1441 = vmatpush3.bf16.msra.mxu1 %v1438_v17 }
 0x10f   : > { %1443 = vmatprep.subr.bf16.mxu1 %v1442_v20 }
 0x112   : > { %1445 = vmatpush3.bf16.msra.mxu1 %v1442_v20 }
 0x113   : > { %1401 = vmatprep.subr.mxu1 %v1533_v1 }
 0x115   : > { %1329 = vmatmul.mubr.f32.vlgmr.msra.gmra.mrb[8].mxu1 %v479_v52 }
 0x116   : > { %1402 = vmatpush3.msk.msra.mxu1 %vm1596_vm2, %v1535_v7  ;;  %1403 = vmatprep.mubr.msk.f32.mxu1 %vm1534_vm0, %v1533_v1  ;;  %v1184_v1 = vld [vmem:[%s1820_s3 + $0x110] sm:$0xff] }
 0x117   : > { %v1482_v26 = vpack.c.bf16 %v1185_v6, %v1184_v1 }
 0x119   : > { %1404 = vmatmul.mubr.msk.f32.vlgmr.msra.gmra.mrb[10].mxu1 %vm318_vm1, %v937_v24 }
 0x1c4   : > { %v1288_v7 = vpop.f32.mrb[4].mxu1 }
 0x1c5   : > { %v570_v25 = vpop.f32.mrb[5].mxu1 }
 0x1c6   : > { %1363 = vmatprep.mubr.f32.mxu0 %v570_v25 }
 0x1c7   : > { %1364 = vmatmul.mubr.f32.vlgmr.msra.gmra.mrb[0].mxu0 %v1288_v7 }
 0x1c8   : > { %1481 = vmatpush3.bf16.msra.mxu0 %v1478_v23  ;;  %v1295_v29 = vpop.f32.mrb[6].mxu1 }
 0x1c9   : > { %1483 = vmatprep.subr.bf16.mxu0 %v1482_v26  ;;  %v651_v31 = vpop.f32.mrb[7].mxu1 }
 0x1ca   : > { %1398 = vmatprep.mubr.f32.mxu0 %v651_v31 }
 0x1cc   : > { %1485 = vmatpush3.bf16.msra.mxu0 %v1482_v26 }
 0x1cd   : > { %1487 = vmatprep.subr.bf16.mxu0 %v1486_v30 }
 0x1d0   : > { %1489 = vmatpush3.bf16.msra.mxu0 %v1486_v30 }
 0x1d1   : > { %1491 = vmatprep.subr.bf16.mxu0 %v1490_v34 }
 0x1d4   : > { %1493 = vmatpush3.bf16.msra.mxu0 %v1490_v34 }
 0x1d5   : > { %1495 = vmatprep.subr.bf16.mxu0 %v1494_v38 }
 0x1d8   : > { %1497 = vmatpush3.bf16.msra.mxu0 %v1494_v38 }
 0x1d9   : > { %1499 = vmatprep.subr.bf16.mxu0 %v1498_v41 }
 0x1dc   : > { %1501 = vmatpush3.bf16.msra.mxu0 %v1498_v41 }
 0x1dd   : > { %1503 = vmatprep.subr.bf16.mxu0 %v1502_v44 }
 0x1e0   : > { %1505 = vmatpush3.bf16.msra.mxu0 %v1502_v44 }
 0x1e1   : > { %1507 = vmatprep.subr.bf16.mxu0 %v1506_v47 }
 0x1e4   : > { %1509 = vmatpush3.bf16.msra.mxu0 %v1506_v47 }
 0x1e7   : > { %1399 = vmatmul.mubr.f32.vlgmr.msra.gmra.mrb[0].mxu0 %v1295_v29 }
 0x1e8   : > { %v1330_v48 = vpop.f32.mrb[8].mxu1 }
 0x1e9   : > { %v759_v49 = vpop.f32.mrb[9].mxu1 }
 0x1ec   : > { %v1007_v50 = vpop.f32.mrb[10].mxu1 }
 0x1ed   : > { %v1405_v51 = vpop.f32.mrb[11].mxu1  ;;  %v1014_v52 = vrot.slane %v1007_v50, %v1674_v35 }
 0x2ba   : > { %v1400_v53 = vpop.f32.mrb[0].mxu0 }
 0x2bb   : > { %v1510_v54 = vadd.f32 %v1400_v53, %v1330_v48  ;;  %v926_v55 = vpop.f32.mrb[1].mxu0 }
 0x2bc   : > { %v1511_v56 = vadd.f32 %v926_v55, %v759_v49 }
 0x2bd   : > { %v1016_v57 = vadd.f32 %v1510_v54, %v1014_v52 }
 0x2be   : > { %v1015_v58 = vadd.f32 %v1511_v56, %v1014_v52 }
 0x2bf   : > { %v1026_v59 = vmul.f32 %v1016_v57, %v1016_v57  ;;  %1036 = vst [vmem:[%s289_s9 + $0x8] sm:$0xff] %v1016_v57 }
 0x2c0   : > { %v1017_v60 = vadd.f32 %v1016_v57, %v1015_v58  ;;  %v1025_v61 = vmul.f32 %v1015_v58, %v1015_v58  ;;  %1035 = vst [vmem:[%s289_s9] sm:$0xff] %v1015_v58 }
 0x2c2   : > { %v1018_v62 = vrot.slane %v1017_v60, 4  ;;  %v1027_v35 = vadd.f32 %v1026_v59, %v1025_v61 }
 0x2c4   : > { %v1019_v63 = vadd.f32 %v1018_v62, %v1017_v60  ;;  %v1028_v0 = vrot.slane %v1027_v35, 4 }
 0x2c6   : > { %v1020_v2 = vrot.slane %v1019_v63, 2  ;;  %v1029_v3 = vadd.f32 %v1028_v0, %v1027_v35 }
 0x2c8   : > { %v1021_v4 = vadd.f32 %v1020_v2, %v1019_v63  ;;  %v1030_v5 = vrot.slane %v1029_v3, 2 }
 0x2ca   : > { %v1022_v8 = vrot.slane %v1021_v4, 1  ;;  %v1031_v9 = vadd.f32 %v1030_v5, %v1029_v3 }
 0x2cc   : > { %v1023_v10 = vadd.f32 %v1022_v8, %v1021_v4  ;;  %v1032_v11 = vrot.slane %v1031_v9, 1 }
 0x2ce   : > { %1024 = vst [vmem:[%s292_s11] sm:$0x1] %v1023_v10  ;;  %v1033_v12 = vadd.f32 %v1032_v11, %v1031_v9 }
 0x2d0   : > { %1034 = vst [vmem:[%s295_s14] sm:$0x1] %v1033_v12 }
 0x2d1 PF: > { %s18_s24 = sadd.s32 1, %s1531_s24  }
 0x2d2   : > { %p15_p4 = scmp.ge.s32.totalorder %s18_s24, 4  }
 0x2d4   :  { %17 = sbr.rel (!%p15_p4) target bundleno = 1 (0x1), region = 96 }

// kernel: decoder_block.5
= control target key start
LH: loop header
LB: loop body
LE: loop exit
PB: predicated region body
PF: predicated region fallthrough
CT: control target
= control target key end

     0   :  { %s486_s12 = smov 0   ;;  %s509_s0 = inlined_call_operand.vmem [shape: f32[2,16,128], index: 0, kind: input, shape index: {}]   ;;  %s510_s1 = inlined_call_operand.vmem [shape: f32[1,8], index: 1, kind: input, shape index: {}]   ;;  %s511_s2 = inlined_call_operand.vmem [shape: f32[1,8], index: 2, kind: input, shape index: {}]   ;;  %s512_s3 = inlined_call_operand.vmem [shape: f32[2,16,128], index: 3, kind: output, shape index: {}]  }
   0x1 LB: > { %s412_s13 = sadd.s32 4294967295, %s461_s12   ;;  %p416_p0 = scmp.ge.s32.totalorder %s461_s12, 1  ;;  %s461_s12 = sphi %s486_s12, %s13_s12  }
   0x2   : > { %p137_p1 = scmp.lt.s32.totalorder %s461_s12, 3 }
   0x4   : > { %p138_p2 = pnand %p416_p0, %p137_p1 }
   0x5   : > { %v173_v0 = vlaneseq (!%p138_p2)  ;;  %v463_v1 = vmov (!%p138_p2), 0.0   ;;  %vm464_vm0 = vmmov (!%p138_p2), 0   ;;  %v192_v5 = vld [vmem:[%s510_s1] sm:$0x1] (!%p138_p2)  ;;  %vm193_vm1 = vcmask (!%p138_p2), 64512   ;;  %p161_p3 = scmp.lt.s32.totalorder (!%p138_p2), %s412_s13, 1 }
   0x6   : > { %141 = sbr.rel (%p138_p2) target bundleno = 234 (0xea), region = 32  ;;  %434 = vmatprep.subr.mxu0 (!%p138_p2), %v463_v1  ;;  %436 = vmatprep.mubr.msk.f32.mxu0 (!%p138_p2), %vm464_vm0, %v463_v1  ;;  %v273_v6 = vld [vmem:[%s511_s2] sm:$0x1] (!%p138_p2)  ;;  %v465_v7 = vmov (!%p138_p2), 1.0  }
   0x7   : > { %v174_v2 = vand.u32 (!%p138_p2), 127, %v173_v0  ;;  %v176_v3 = vshrl.u32 (!%p138_p2), %v173_v0, 7  ;;  %439 = vmatprep.subr.mxu1 (!%p138_p2), %v463_v1  ;;  %441 = vmatprep.mubr.msk.f32.mxu1 (!%p138_p2), %vm464_vm0, %v463_v1 }
   0x9   : > { %v181_v4 = vand.u32 (!%p138_p2), 7, %v174_v2  ;;  %v269_v8 = vsub.s32 (!%p138_p2), 0, %v176_v3 }
   0xb   : > { %vm189_vm2 = vcmp.eq.s32.totalorder (!%p138_p2), %v181_v4, %v176_v3 }
   0xc   : > { %435 = vmatpush3.msk.msra.mxu0 (!%p138_p2), %vm189_vm2, %v465_v7  ;;  %440 = vmatpush3.msk.msra.mxu1 (!%p138_p2), %vm189_vm2, %v465_v7 }
   0xd   : > { %437 = vmatmul.mubr.msk.f32.vlgmr.msra.gmra.mrb[0].mxu0 %vm193_vm1, %v192_v5  ;;  %442 = vmatmul.mubr.msk.f32.vlgmr.msra.gmra.mrb[0].mxu1 %vm193_vm1, %v273_v6  ;;  %s514_s13 = smov (!%p161_p3, %s412_s13), 1 }
   0xe   : > { %s428_s18 = sshll.u32 %s514_s13, 4 }
   0xf   : > { %s165_s21 = scalar_lea.vmem %s509_s0, %s428_s18  ;;  %s170_s24 = scalar_lea.vmem %s512_s3, %s428_s18 }
  0x10   : > { %v171_v9 = vld [vmem:[%s165_s21] sm:$0xff]  ;;  %v172_v10 = vld [vmem:[%s165_s21 + $0x8] sm:$0xff] }
  0xe0   : > { %v263_v11 = vpop.f32.mrb[0].mxu0  ;;  %v343_v12 = vpop.f32.mrb[0].mxu1 }
  0xe1   : > { %v270_v13 = vrot.slane %v263_v11, %v269_v8  ;;  %v438_v14 = vpop.f32.mrb[1].mxu0  ;;  %v350_v15 = vrot.slane %v343_v12, %v269_v8  ;;  %v443_v16 = vpop.f32.mrb[1].mxu1 }
  0xe3   : > { %v271_v17 = vmul.f32 %v270_v13, %v171_v9  ;;  %v272_v18 = vmul.f32 %v270_v13, %v172_v10 }
  0xe5   : > { %v351_v19 = vadd.f32 %v350_v15, %v271_v17  ;;  %v352_v20 = vadd.f32 %v350_v15, %v272_v18 }
  0xe7   : > { %v353_v21 = vmax.f32 %v351_v19, 0.0  ;;  %v354_v22 = vmax.f32 %v352_v20, 0.0 }
  0xe9   : > { %355 = vst [vmem:[%s170_s24] sm:$0xff] %v353_v21  ;;  %356 = vst [vmem:[%s170_s24 + $0x8] sm:$0xff] %v354_v22 }
  0xea PF: > { %s13_s12 = sadd.s32 1, %s461_s12  }
  0xeb   : > { %p10_p4 = scmp.ge.s32.totalorder %s13_s12, 4  }
  0xed   :  { %12 = sbr.rel (!%p10_p4) target bundleno = 1 (0x1), region = 62 }

</bundles_post_ra>
